<compile_context>
chip_gen: v6e
topology: v6e:2x2x1
jax: 0.10.0
libtpu: 0.0.40
codegen_flags: <defaults>
</compile_context>

<pallas_src>
import jax
import jax.numpy as jnp
import numpy as np
from jax.experimental import pallas as pl
from jax.experimental.pallas import tpu as pltpu

EPS = 1e-5  # nn.BatchNorm2d default eps


def _silu_f32(y):
    # Exact SiLU in f32.
    # TODO(synk): with relaxed parity, use pl.reciprocal(..., approx=True) to move the
    #             divide onto the EUP (free bundle slot on all generations).
    return y * (1.0 / (1.0 + jnp.exp(-y)))


def _vmem_limit_bytes():
    """Generation-aware scoped-VMEM cap: ~3/4 of physical, never above 100 MiB."""
    cap = 128 * 1024 * 1024
    try:
        cap = int(pltpu.get_tpu_info().vmem_capacity_bytes)
    except Exception:
        pass
    return min(cap * 3 // 4, 100 * 1024 * 1024)


# ----------------------------- fully fused C2f kernel -----------------------------
def _make_c2f_kernel(c, n, H, W, add):
    HW = H * W
    offsets = [(dy, dx) for dy in (-1, 0, 1) for dx in (-1, 0, 1)]
    # lane shift that brings tap (dy, dx) of the flattened image onto position p
    shifts = [(-(dy * W + dx)) % HW for dy, dx in offsets]

    if HW % 128 == 0:
        def _roll(v, s):
            return v if s == 0 else pltpu.roll(v, s, axis=1)   # XLU lane rotate
    else:
        def _roll(v, s):
            return v if s == 0 else jnp.roll(v, s, axis=1)     # layout-safe fallback

    def build_masks():
        # masks[t]: (1, HW) f32, 1.0 iff tap t stays inside the image; None = center tap.
        p = jax.lax.broadcasted_iota(jnp.int32, (1, HW), 1)
        if W & (W - 1) == 0:
            ww = jnp.bitwise_and(p, W - 1)      # p % W (power-of-two W)
        else:
            ww = jax.lax.rem(p, W)
        row = {-1: p >= W, 0: None, 1: p < (H - 1) * W}
        col = {-1: ww >= 1, 0: None, 1: ww < W - 1}
        masks = []
        for dy, dx in offsets:
            conds = [m for m in (row[dy], col[dx]) if m is not None]
            if not conds:
                masks.append(None)
            else:
                v = conds[0]
                for other in conds[1:]:
                    v = jnp.logical_and(v, other)
                masks.append(jnp.where(v, 1.0, 0.0).astype(jnp.float32))
        return masks

    def conv3x3(x, w_ref, b_ref, masks):
        # x: (cin, HW) f32.  w_ref: (cout, 9*cin) tap-major.  b_ref: (cout, 1).
        cin = x.shape[0]

        def tap(t):
            if masks[t] is None:
                return x                                        # center tap, always valid
            return _roll(x, shifts[t]) * masks[t]

        if 9 * cin <= 1024:
            # Small c: accumulate 9 K=cin dots -- no (9c, HW) im2col tensor, only one
            # tap live at a time (keeps vreg/VMEM temp pressure low).
            acc = jnp.dot(w_ref[:, 4 * cin:5 * cin], tap(4),
                          preferred_element_type=jnp.float32)
            for t in range(9):
                if t == 4:
                    continue
                acc = acc + jnp.dot(w_ref[:, t * cin:(t + 1) * cin], tap(t),
                                    preferred_element_type=jnp.float32)
        else:
            # Large c: one K=9c MXU matmul over the patch tensor.
            patch = jnp.concatenate([tap(t) for t in range(9)], axis=0)
            acc = jnp.dot(w_ref[...], patch, preferred_element_type=jnp.float32)
        return _silu_f32(acc + b_ref[...])

    def kernel(*refs):
        x_ref = refs[0]
        w_cv1, b_cv1 = refs[1], refs[2]
        m_refs = refs[3:3 + 4 * n]
        w_cv2, b_cv2 = refs[3 + 4 * n], refs[4 + 4 * n]
        o_ref = refs[5 + 4 * n]
        y_scr = refs[6 + 4 * n]          # ((2+n)*c, HW) f32 VMEM scratch

        masks = build_masks()

        # ---- cv1: 1x1 conv + folded BN + SiLU; result kept resident in VMEM ----
        x = x_ref[0].astype(jnp.float32)                                   # (C1, HW)
        y_scr[0:2 * c, :] = _silu_f32(
            jnp.dot(w_cv1[...], x, preferred_element_type=jnp.float32) + b_cv1[...])

        # ---- n bottlenecks: 3x3 -> 3x3 -> optional residual, all VMEM-resident ----
        off = c                          # first bottleneck reads y0's second half
        for i in range(n):
            w1, b1, w2, b2 = m_refs[4 * i:4 * i + 4]
            h = conv3x3(y_scr[off:off + c, :], w1, b1, masks)
            h = conv3x3(h, w2, b2, masks)
            if add:
                h = h + y_scr[off:off + c, :]    # re-read residual (short live range)
            off = 2 * c + i * c
            y_scr[off:off + c, :] = h

        # ---- cv2 over the VMEM-resident concat (never materialized in HBM) ----
        o_ref[0] = _silu_f32(
            jnp.dot(w_cv2[...], y_scr[...], preferred_element_type=jnp.float32)
            + b_cv2[...]).astype(o_ref.dtype)

    return kernel


def c2f_forward_pallas(x_nchw, params):
    N, C1, H, W = x_nchw.shape
    c, n = params["c"], params["n"]
    c2 = params["cv2"]["w"].shape[0]
    add = params["m"][0]["add"] if n > 0 else False
    HW = H * W
    x = x_nchw.reshape(N, C1, HW)        # NCHW-native, spatial flattened into lanes

    def full(shape):                     # whole-array block, same every grid step
        return pl.BlockSpec(shape, lambda b: (0,) * len(shape))

    inputs = [x, params["cv1"]["w"], params["cv1"]["b"].reshape(2 * c, 1)]
    in_specs = [pl.BlockSpec((1, C1, HW), lambda b: (b, 0, 0)),
                full((2 * c, C1)), full((2 * c, 1))]
    for blk in params["m"]:
        inputs += [blk["cv1"]["w"], blk["cv1"]["b"].reshape(c, 1),
                   blk["cv2"]["w"], blk["cv2"]["b"].reshape(c, 1)]
        in_specs += [full((c, 9 * c)), full((c, 1)),
                     full((c, 9 * c)), full((c, 1))]
    inputs += [params["cv2"]["w"], params["cv2"]["b"].reshape(c2, 1)]
    in_specs += [full((c2, (2 + n) * c)), full((c2, 1))]

    out = pl.pallas_call(
        _make_c2f_kernel(c, n, H, W, add),
        out_shape=jax.ShapeDtypeStruct((N, c2, HW), x.dtype),
        grid=(N,),
        in_specs=in_specs,
        out_specs=pl.BlockSpec((1, c2, HW), lambda b: (b, 0, 0)),
        scratch_shapes=[pltpu.VMEM(((2 + n) * c, HW), jnp.float32)],
        compiler_params=pltpu.CompilerParams(
            dimension_semantics=("parallel",),
            vmem_limit_bytes=_vmem_limit_bytes()),
    )(*inputs)
    return out.reshape(N, c2, H, W)


# --------------------------------- parameter setup ---------------------------------
def _fold_bn(gamma, beta, mean, var):
    s = gamma / jnp.sqrt(var + EPS)
    b = beta - mean * s
    return s, b


def init_conv_block(key, c_in, c_out, k):
    k1, k2, k3, k4, k5 = jax.random.split(key, 5)
    w_oihw = jax.random.normal(k1, (c_out, c_in, k, k), jnp.float32) * 0.1
    gamma = 1.0 + 0.1 * jax.random.normal(k2, (c_out,), jnp.float32)
    beta = 0.1 * jax.random.normal(k3, (c_out,), jnp.float32)
    mean = 0.1 * jax.random.normal(k4, (c_out,), jnp.float32)
    var = jnp.abs(jax.random.normal(k5, (c_out,), jnp.float32)) * 0.1 + 0.5
    s, b = _fold_bn(gamma, beta, mean, var)
    if k == 1:
        w_mat = w_oihw.reshape(c_out, c_in) * s[:, None]            # (Cout, Cin), BN folded
    else:
        # (Cout, 9*Cin), tap-major: column = (ky*3 + kx)*Cin + ci, BN scale folded
        w_mat = (jnp.transpose(w_oihw, (0, 2, 3, 1)).reshape(c_out, k * k * c_in)
                 * s[:, None])
    return {"w": w_mat, "b": b, "s": s, "w_oihw": w_oihw, "k": k}


def init_c2f_params(key, c1, c2, n=1, shortcut=False, e=0.5):
    c = int(c2 * e)
    keys = jax.random.split(key, 2 + 2 * n)
    params = {"c": c, "n": n}
    params["cv1"] = init_conv_block(keys[0], c1, 2 * c, 1)
    params["cv2"] = init_conv_block(keys[1], (2 + n) * c, c2, 1)
    params["m"] = []
    for i in range(n):
        b1 = init_conv_block(keys[2 + 2 * i], c, c, 3)
        b2 = init_conv_block(keys[3 + 2 * i], c, c, 3)
        # Bottleneck(c, c, shortcut, e=1.0): add = shortcut and c1 == c2 (true here)
        params["m"].append({"cv1": b1, "cv2": b2, "add": bool(shortcut)})
    return params


# -------------------------- pure-JAX reference (for check) --------------------------
def _ref_conv_block(x_nchw, blk):
    k = blk["k"]
    pad = k // 2
    y = jax.lax.conv_general_dilated(
        x_nchw, blk["w_oihw"], (1, 1), ((pad, pad), (pad, pad)),
        dimension_numbers=("NCHW", "OIHW", "NCHW"))
    s = blk["s"].reshape(1, -1, 1, 1)
    b = blk["b"].reshape(1, -1, 1, 1)
    y = y * s + b
    return y * jax.nn.sigmoid(y)


def c2f_forward_ref(x_nchw, params):
    c = params["c"]
    y0 = _ref_conv_block(x_nchw, params["cv1"])
    ys = [y0[:, :c], y0[:, c:]]
    cur = ys[-1]
    for blk in params["m"]:
        h = _ref_conv_block(cur, blk["cv1"])
        h = _ref_conv_block(h, blk["cv2"])
        cur = cur + h if blk["add"] else h
        ys.append(cur)
    ycat = jnp.concatenate(ys, axis=1)
    return _ref_conv_block(ycat, params["cv2"])


# ----------------------------------------- main -------------------------------------
if __name__ == "__main__":
    # C2f(16, 16, n=2, shortcut=True): hidden c = 8, two fused bottlenecks.
    c1, c2, n, shortcut = 16, 16, 2, True
    N, H, W = 2, 16, 16

    key = jax.random.PRNGKey(0)
    kx, kp = jax.random.split(key)
    x = jax.random.normal(kx, (N, c1, H, W), jnp.float32)
    params = init_c2f_params(kp, c1, c2, n=n, shortcut=shortcut)

    fwd = jax.jit(lambda inp: c2f_forward_pallas(inp, params))
    out = jax.block_until_ready(fwd(x))
    ref = jax.block_until_ready(c2f_forward_ref(x, params))

    assert out.shape == (N, c2, H, W), out.shape
    np.testing.assert_allclose(np.asarray(out), np.asarray(ref),
                               atol=2e-4, rtol=2e-4)
    print("KERNEL_OK")
</pallas_src>

<mosaic_0001>
module attributes {stable_mosaic.version = 11 : i64} {
  func.func @kernel(%arg0: i32, %arg1: memref<1x16x256xf32, #tpu.memory_space<vmem>>, %arg2: memref<16x16xf32, #tpu.memory_space<vmem>>, %arg3: memref<16x1xf32, #tpu.memory_space<vmem>>, %arg4: memref<8x72xf32, #tpu.memory_space<vmem>>, %arg5: memref<8x1xf32, #tpu.memory_space<vmem>>, %arg6: memref<8x72xf32, #tpu.memory_space<vmem>>, %arg7: memref<8x1xf32, #tpu.memory_space<vmem>>, %arg8: memref<8x72xf32, #tpu.memory_space<vmem>>, %arg9: memref<8x1xf32, #tpu.memory_space<vmem>>, %arg10: memref<8x72xf32, #tpu.memory_space<vmem>>, %arg11: memref<8x1xf32, #tpu.memory_space<vmem>>, %arg12: memref<16x32xf32, #tpu.memory_space<vmem>>, %arg13: memref<16x1xf32, #tpu.memory_space<vmem>>, %arg14: memref<1x16x256xf32, #tpu.memory_space<vmem>>, %arg15: memref<32x256xf32, #tpu.memory_space<vmem>>) attributes {dimension_semantics = [#tpu.dimension_semantics<parallel>], iteration_bounds = array<i64: 2>, scalar_prefetch = 0 : i64, scratch_operands = 1 : i64, tpu.core_type = #tpu.core_type<tc>, window_params = [{transform_indices = @transform_0, window_bounds = array<i64: 1, 16, 256>}, {pipeline_mode = #tpu.pipeline_mode<synchronous>, transform_indices = @transform_1, window_bounds = array<i64: 16, 16>}, {pipeline_mode = #tpu.pipeline_mode<synchronous>, transform_indices = @transform_2, window_bounds = array<i64: 16, 1>}, {pipeline_mode = #tpu.pipeline_mode<synchronous>, transform_indices = @transform_3, window_bounds = array<i64: 8, 72>}, {pipeline_mode = #tpu.pipeline_mode<synchronous>, transform_indices = @transform_4, window_bounds = array<i64: 8, 1>}, {pipeline_mode = #tpu.pipeline_mode<synchronous>, transform_indices = @transform_5, window_bounds = array<i64: 8, 72>}, {pipeline_mode = #tpu.pipeline_mode<synchronous>, transform_indices = @transform_6, window_bounds = array<i64: 8, 1>}, {pipeline_mode = #tpu.pipeline_mode<synchronous>, transform_indices = @transform_7, window_bounds = array<i64: 8, 72>}, {pipeline_mode = #tpu.pipeline_mode<synchronous>, transform_indices = @transform_8, window_bounds = array<i64: 8, 1>}, {pipeline_mode = #tpu.pipeline_mode<synchronous>, transform_indices = @transform_9, window_bounds = array<i64: 8, 72>}, {pipeline_mode = #tpu.pipeline_mode<synchronous>, transform_indices = @transform_10, window_bounds = array<i64: 8, 1>}, {pipeline_mode = #tpu.pipeline_mode<synchronous>, transform_indices = @transform_11, window_bounds = array<i64: 16, 32>}, {pipeline_mode = #tpu.pipeline_mode<synchronous>, transform_indices = @transform_12, window_bounds = array<i64: 16, 1>}, {transform_indices = @transform_13, window_bounds = array<i64: 1, 16, 256>}]} {
    %0 = tpu.iota {dimensions = array<i32: 1>} : vector<1x256xi32>
    %c15_i32 = arith.constant 15 : i32
    %1 = vector.broadcast %c15_i32 : i32 to vector<1x256xi32>
    %2 = arith.andi %0, %1 : vector<1x256xi32>
    %c16_i32 = arith.constant 16 : i32
    %3 = vector.broadcast %c16_i32 : i32 to vector<1x256xi32>
    %4 = arith.cmpi sge, %0, %3 : vector<1x256xi32>
    %c240_i32 = arith.constant 240 : i32
    %5 = vector.broadcast %c240_i32 : i32 to vector<1x256xi32>
    %6 = arith.cmpi slt, %0, %5 : vector<1x256xi32>
    %c1_i32 = arith.constant 1 : i32
    %7 = vector.broadcast %c1_i32 : i32 to vector<1x256xi32>
    %8 = arith.cmpi sge, %2, %7 : vector<1x256xi32>
    %c15_i32_0 = arith.constant 15 : i32
    %9 = vector.broadcast %c15_i32_0 : i32 to vector<1x256xi32>
    %10 = arith.cmpi slt, %2, %9 : vector<1x256xi32>
    %11 = arith.andi %4, %8 : vector<1x256xi1>
    %cst = arith.constant 1.000000e+00 : f32
    %cst_1 = arith.constant 0.000000e+00 : f32
    %12 = vector.broadcast %cst : f32 to vector<1x256xf32>
    %13 = vector.broadcast %cst_1 : f32 to vector<1x256xf32>
    %14 = arith.select %11, %12, %13 : vector<1x256xi1>, vector<1x256xf32>
    %cst_2 = arith.constant 1.000000e+00 : f32
    %cst_3 = arith.constant 0.000000e+00 : f32
    %15 = vector.broadcast %cst_2 : f32 to vector<1x256xf32>
    %16 = vector.broadcast %cst_3 : f32 to vector<1x256xf32>
    %17 = arith.select %4, %15, %16 : vector<1x256xi1>, vector<1x256xf32>
    %18 = arith.andi %4, %10 : vector<1x256xi1>
    %cst_4 = arith.constant 1.000000e+00 : f32
    %cst_5 = arith.constant 0.000000e+00 : f32
    %19 = vector.broadcast %cst_4 : f32 to vector<1x256xf32>
    %20 = vector.broadcast %cst_5 : f32 to vector<1x256xf32>
    %21 = arith.select %18, %19, %20 : vector<1x256xi1>, vector<1x256xf32>
    %cst_6 = arith.constant 1.000000e+00 : f32
    %cst_7 = arith.constant 0.000000e+00 : f32
    %22 = vector.broadcast %cst_6 : f32 to vector<1x256xf32>
    %23 = vector.broadcast %cst_7 : f32 to vector<1x256xf32>
    %24 = arith.select %8, %22, %23 : vector<1x256xi1>, vector<1x256xf32>
    %cst_8 = arith.constant 1.000000e+00 : f32
    %cst_9 = arith.constant 0.000000e+00 : f32
    %25 = vector.broadcast %cst_8 : f32 to vector<1x256xf32>
    %26 = vector.broadcast %cst_9 : f32 to vector<1x256xf32>
    %27 = arith.select %10, %25, %26 : vector<1x256xi1>, vector<1x256xf32>
    %28 = arith.andi %6, %8 : vector<1x256xi1>
    %cst_10 = arith.constant 1.000000e+00 : f32
    %cst_11 = arith.constant 0.000000e+00 : f32
    %29 = vector.broadcast %cst_10 : f32 to vector<1x256xf32>
    %30 = vector.broadcast %cst_11 : f32 to vector<1x256xf32>
    %31 = arith.select %28, %29, %30 : vector<1x256xi1>, vector<1x256xf32>
    %cst_12 = arith.constant 1.000000e+00 : f32
    %cst_13 = arith.constant 0.000000e+00 : f32
    %32 = vector.broadcast %cst_12 : f32 to vector<1x256xf32>
    %33 = vector.broadcast %cst_13 : f32 to vector<1x256xf32>
    %34 = arith.select %6, %32, %33 : vector<1x256xi1>, vector<1x256xf32>
    %35 = arith.andi %6, %10 : vector<1x256xi1>
    %cst_14 = arith.constant 1.000000e+00 : f32
    %cst_15 = arith.constant 0.000000e+00 : f32
    %36 = vector.broadcast %cst_14 : f32 to vector<1x256xf32>
    %37 = vector.broadcast %cst_15 : f32 to vector<1x256xf32>
    %38 = arith.select %35, %36, %37 : vector<1x256xi1>, vector<1x256xf32>
    %c0 = arith.constant 0 : index
    %c0_16 = arith.constant 0 : index
    %c0_17 = arith.constant 0 : index
    %39 = vector.load %arg1[%c0, %c0_16, %c0_17] : memref<1x16x256xf32, #tpu.memory_space<vmem>>, vector<1x16x256xf32>
    %40 = vector.shape_cast %39 : vector<1x16x256xf32> to vector<16x256xf32>
    %c0_18 = arith.constant 0 : index
    %c0_19 = arith.constant 0 : index
    %41 = vector.load %arg2[%c0_18, %c0_19] : memref<16x16xf32, #tpu.memory_space<vmem>>, vector<16x16xf32>
    %cst_20 = arith.constant dense<0.000000e+00> : vector<16x256xf32>
    %42 = tpu.matmul %41, %40, %cst_20 {dimension_numbers = #tpu.dot_dimension_numbers<[1], [0], [0], [1], [0, 0, 1, 1], [], []>} : vector<16x16xf32>, vector<16x256xf32>, vector<16x256xf32> -> vector<16x256xf32>
    %c0_21 = arith.constant 0 : index
    %c0_22 = arith.constant 0 : index
    %43 = vector.load %arg3[%c0_21, %c0_22] : memref<16x1xf32, #tpu.memory_space<vmem>>, vector<16x1xf32>
    %44 = vector.broadcast %43 : vector<16x1xf32> to vector<16x256xf32>
    %45 = arith.addf %42, %44 : vector<16x256xf32>
    %cst_23 = arith.constant 0.000000e+00 : f32
    %46 = vector.broadcast %cst_23 : f32 to vector<16x256xf32>
    %47 = arith.subf %46, %45 : vector<16x256xf32>
    %48 = math.exp %47 : vector<16x256xf32>
    %cst_24 = arith.constant 1.000000e+00 : f32
    %49 = vector.broadcast %cst_24 : f32 to vector<16x256xf32>
    %50 = arith.addf %49, %48 : vector<16x256xf32>
    %cst_25 = arith.constant 1.000000e+00 : f32
    %51 = vector.broadcast %cst_25 : f32 to vector<16x256xf32>
    %52 = arith.divf %51, %50 : vector<16x256xf32>
    %53 = arith.mulf %45, %52 : vector<16x256xf32>
    %c0_26 = arith.constant 0 : index
    %c0_27 = arith.constant 0 : index
    %54 = vector.load %arg15[%c0_26, %c0_27] : memref<32x256xf32, #tpu.memory_space<vmem>>, vector<16x256xf32>
    tpu.vector_store %arg15[%c0_26, %c0_27], %53 {strides = array<i32>} : memref<32x256xf32, #tpu.memory_space<vmem>>, vector<16x256xf32>,
    %c8 = arith.constant 8 : index
    %c0_28 = arith.constant 0 : index
    %55 = vector.load %arg15[%c8, %c0_28] : memref<32x256xf32, #tpu.memory_space<vmem>>, vector<8x256xf32>
    %c0_29 = arith.constant 0 : index
    %c32 = arith.constant 32 : index
    %56 = vector.load %arg4[%c0_29, %c32] : memref<8x72xf32, #tpu.memory_space<vmem>>, vector<8x8xf32>
    %cst_30 = arith.constant dense<0.000000e+00> : vector<8x256xf32>
    %57 = tpu.matmul %56, %55, %cst_30 {dimension_numbers = #tpu.dot_dimension_numbers<[1], [0], [0], [1], [0, 0, 1, 1], [], []>} : vector<8x8xf32>, vector<8x256xf32>, vector<8x256xf32> -> vector<8x256xf32>
    %c0_31 = arith.constant 0 : index
    %c0_32 = arith.constant 0 : index
    %58 = vector.load %arg4[%c0_31, %c0_32] : memref<8x72xf32, #tpu.memory_space<vmem>>, vector<8x8xf32>
    %c17_i32 = arith.constant 17 : i32
    %59 = tpu.dynamic_rotate %55 by %c17_i32 dim 1 : vector<8x256xf32>, i32 -> vector<8x256xf32>
    %60 = vector.broadcast %14 : vector<1x256xf32> to vector<8x256xf32>
    %61 = arith.mulf %59, %60 : vector<8x256xf32>
    %cst_33 = arith.constant dense<0.000000e+00> : vector<8x256xf32>
    %62 = tpu.matmul %58, %61, %cst_33 {dimension_numbers = #tpu.dot_dimension_numbers<[1], [0], [0], [1], [0, 0, 1, 1], [], []>} : vector<8x8xf32>, vector<8x256xf32>, vector<8x256xf32> -> vector<8x256xf32>
    %63 = arith.addf %57, %62 : vector<8x256xf32>
    %c0_34 = arith.constant 0 : index
    %c8_35 = arith.constant 8 : index
    %64 = vector.load %arg4[%c0_34, %c8_35] : memref<8x72xf32, #tpu.memory_space<vmem>>, vector<8x8xf32>
    %c16_i32_36 = arith.constant 16 : i32
    %65 = tpu.dynamic_rotate %55 by %c16_i32_36 dim 1 : vector<8x256xf32>, i32 -> vector<8x256xf32>
    %66 = vector.broadcast %17 : vector<1x256xf32> to vector<8x256xf32>
    %67 = arith.mulf %65, %66 : vector<8x256xf32>
    %cst_37 = arith.constant dense<0.000000e+00> : vector<8x256xf32>
    %68 = tpu.matmul %64, %67, %cst_37 {dimension_numbers = #tpu.dot_dimension_numbers<[1], [0], [0], [1], [0, 0, 1, 1], [], []>} : vector<8x8xf32>, vector<8x256xf32>, vector<8x256xf32> -> vector<8x256xf32>
    %69 = arith.addf %63, %68 : vector<8x256xf32>
    %c0_38 = arith.constant 0 : index
    %c16 = arith.constant 16 : index
    %70 = vector.load %arg4[%c0_38, %c16] : memref<8x72xf32, #tpu.memory_space<vmem>>, vector<8x8xf32>
    %c15_i32_39 = arith.constant 15 : i32
    %71 = tpu.dynamic_rotate %55 by %c15_i32_39 dim 1 : vector<8x256xf32>, i32 -> vector<8x256xf32>
    %72 = vector.broadcast %21 : vector<1x256xf32> to vector<8x256xf32>
    %73 = arith.mulf %71, %72 : vector<8x256xf32>
    %cst_40 = arith.constant dense<0.000000e+00> : vector<8x256xf32>
    %74 = tpu.matmul %70, %73, %cst_40 {dimension_numbers = #tpu.dot_dimension_numbers<[1], [0], [0], [1], [0, 0, 1, 1], [], []>} : vector<8x8xf32>, vector<8x256xf32>, vector<8x256xf32> -> vector<8x256xf32>
    %75 = arith.addf %69, %74 : vector<8x256xf32>
    %c0_41 = arith.constant 0 : index
    %c24 = arith.constant 24 : index
    %76 = vector.load %arg4[%c0_41, %c24] : memref<8x72xf32, #tpu.memory_space<vmem>>, vector<8x8xf32>
    %c1_i32_42 = arith.constant 1 : i32
    %77 = tpu.dynamic_rotate %55 by %c1_i32_42 dim 1 : vector<8x256xf32>, i32 -> vector<8x256xf32>
    %78 = vector.broadcast %24 : vector<1x256xf32> to vector<8x256xf32>
    %79 = arith.mulf %77, %78 : vector<8x256xf32>
    %cst_43 = arith.constant dense<0.000000e+00> : vector<8x256xf32>
    %80 = tpu.matmul %76, %79, %cst_43 {dimension_numbers = #tpu.dot_dimension_numbers<[1], [0], [0], [1], [0, 0, 1, 1], [], []>} : vector<8x8xf32>, vector<8x256xf32>, vector<8x256xf32> -> vector<8x256xf32>
    %81 = arith.addf %75, %80 : vector<8x256xf32>
    %c0_44 = arith.constant 0 : index
    %c40 = arith.constant 40 : index
    %82 = vector.load %arg4[%c0_44, %c40] : memref<8x72xf32, #tpu.memory_space<vmem>>, vector<8x8xf32>
    %c255_i32 = arith.constant 255 : i32
    %83 = tpu.dynamic_rotate %55 by %c255_i32 dim 1 : vector<8x256xf32>, i32 -> vector<8x256xf32>
    %84 = vector.broadcast %27 : vector<1x256xf32> to vector<8x256xf32>
    %85 = arith.mulf %83, %84 : vector<8x256xf32>
    %cst_45 = arith.constant dense<0.000000e+00> : vector<8x256xf32>
    %86 = tpu.matmul %82, %85, %cst_45 {dimension_numbers = #tpu.dot_dimension_numbers<[1], [0], [0], [1], [0, 0, 1, 1], [], []>} : vector<8x8xf32>, vector<8x256xf32>, vector<8x256xf32> -> vector<8x256xf32>
    %87 = arith.addf %81, %86 : vector<8x256xf32>
    %c0_46 = arith.constant 0 : index
    %c48 = arith.constant 48 : index
    %88 = vector.load %arg4[%c0_46, %c48] : memref<8x72xf32, #tpu.memory_space<vmem>>, vector<8x8xf32>
    %c241_i32 = arith.constant 241 : i32
    %89 = tpu.dynamic_rotate %55 by %c241_i32 dim 1 : vector<8x256xf32>, i32 -> vector<8x256xf32>
    %90 = vector.broadcast %31 : vector<1x256xf32> to vector<8x256xf32>
    %91 = arith.mulf %89, %90 : vector<8x256xf32>
    %cst_47 = arith.constant dense<0.000000e+00> : vector<8x256xf32>
    %92 = tpu.matmul %88, %91, %cst_47 {dimension_numbers = #tpu.dot_dimension_numbers<[1], [0], [0], [1], [0, 0, 1, 1], [], []>} : vector<8x8xf32>, vector<8x256xf32>, vector<8x256xf32> -> vector<8x256xf32>
    %93 = arith.addf %87, %92 : vector<8x256xf32>
    %c0_48 = arith.constant 0 : index
    %c56 = arith.constant 56 : index
    %94 = vector.load %arg4[%c0_48, %c56] : memref<8x72xf32, #tpu.memory_space<vmem>>, vector<8x8xf32>
    %c240_i32_49 = arith.constant 240 : i32
    %95 = tpu.dynamic_rotate %55 by %c240_i32_49 dim 1 : vector<8x256xf32>, i32 -> vector<8x256xf32>
    %96 = vector.broadcast %34 : vector<1x256xf32> to vector<8x256xf32>
    %97 = arith.mulf %95, %96 : vector<8x256xf32>
    %cst_50 = arith.constant dense<0.000000e+00> : vector<8x256xf32>
    %98 = tpu.matmul %94, %97, %cst_50 {dimension_numbers = #tpu.dot_dimension_numbers<[1], [0], [0], [1], [0, 0, 1, 1], [], []>} : vector<8x8xf32>, vector<8x256xf32>, vector<8x256xf32> -> vector<8x256xf32>
    %99 = arith.addf %93, %98 : vector<8x256xf32>
    %c0_51 = arith.constant 0 : index
    %c64 = arith.constant 64 : index
    %100 = vector.load %arg4[%c0_51, %c64] : memref<8x72xf32, #tpu.memory_space<vmem>>, vector<8x8xf32>
    %c239_i32 = arith.constant 239 : i32
    %101 = tpu.dynamic_rotate %55 by %c239_i32 dim 1 : vector<8x256xf32>, i32 -> vector<8x256xf32>
    %102 = vector.broadcast %38 : vector<1x256xf32> to vector<8x256xf32>
    %103 = arith.mulf %101, %102 : vector<8x256xf32>
    %cst_52 = arith.constant dense<0.000000e+00> : vector<8x256xf32>
    %104 = tpu.matmul %100, %103, %cst_52 {dimension_numbers = #tpu.dot_dimension_numbers<[1], [0], [0], [1], [0, 0, 1, 1], [], []>} : vector<8x8xf32>, vector<8x256xf32>, vector<8x256xf32> -> vector<8x256xf32>
    %105 = arith.addf %99, %104 : vector<8x256xf32>
    %c0_53 = arith.constant 0 : index
    %c0_54 = arith.constant 0 : index
    %106 = vector.load %arg5[%c0_53, %c0_54] : memref<8x1xf32, #tpu.memory_space<vmem>>, vector<8x1xf32>
    %107 = vector.broadcast %106 : vector<8x1xf32> to vector<8x256xf32>
    %108 = arith.addf %105, %107 : vector<8x256xf32>
    %cst_55 = arith.constant 0.000000e+00 : f32
    %109 = vector.broadcast %cst_55 : f32 to vector<8x256xf32>
    %110 = arith.subf %109, %108 : vector<8x256xf32>
    %111 = math.exp %110 : vector<8x256xf32>
    %cst_56 = arith.constant 1.000000e+00 : f32
    %112 = vector.broadcast %cst_56 : f32 to vector<8x256xf32>
    %113 = arith.addf %112, %111 : vector<8x256xf32>
    %cst_57 = arith.constant 1.000000e+00 : f32
    %114 = vector.broadcast %cst_57 : f32 to vector<8x256xf32>
    %115 = arith.divf %114, %113 : vector<8x256xf32>
    %116 = arith.mulf %108, %115 : vector<8x256xf32>
    %c0_58 = arith.constant 0 : index
    %c32_59 = arith.constant 32 : index
    %117 = vector.load %arg6[%c0_58, %c32_59] : memref<8x72xf32, #tpu.memory_space<vmem>>, vector<8x8xf32>
    %cst_60 = arith.constant dense<0.000000e+00> : vector<8x256xf32>
    %118 = tpu.matmul %117, %116, %cst_60 {dimension_numbers = #tpu.dot_dimension_numbers<[1], [0], [0], [1], [0, 0, 1, 1], [], []>} : vector<8x8xf32>, vector<8x256xf32>, vector<8x256xf32> -> vector<8x256xf32>
    %c0_61 = arith.constant 0 : index
    %c0_62 = arith.constant 0 : index
    %119 = vector.load %arg6[%c0_61, %c0_62] : memref<8x72xf32, #tpu.memory_space<vmem>>, vector<8x8xf32>
    %c17_i32_63 = arith.constant 17 : i32
    %120 = tpu.dynamic_rotate %116 by %c17_i32_63 dim 1 : vector<8x256xf32>, i32 -> vector<8x256xf32>
    %121 = vector.broadcast %14 : vector<1x256xf32> to vector<8x256xf32>
    %122 = arith.mulf %120, %121 : vector<8x256xf32>
    %cst_64 = arith.constant dense<0.000000e+00> : vector<8x256xf32>
    %123 = tpu.matmul %119, %122, %cst_64 {dimension_numbers = #tpu.dot_dimension_numbers<[1], [0], [0], [1], [0, 0, 1, 1], [], []>} : vector<8x8xf32>, vector<8x256xf32>, vector<8x256xf32> -> vector<8x256xf32>
    %124 = arith.addf %118, %123 : vector<8x256xf32>
    %c0_65 = arith.constant 0 : index
    %c8_66 = arith.constant 8 : index
    %125 = vector.load %arg6[%c0_65, %c8_66] : memref<8x72xf32, #tpu.memory_space<vmem>>, vector<8x8xf32>
    %c16_i32_67 = arith.constant 16 : i32
    %126 = tpu.dynamic_rotate %116 by %c16_i32_67 dim 1 : vector<8x256xf32>, i32 -> vector<8x256xf32>
    %127 = vector.broadcast %17 : vector<1x256xf32> to vector<8x256xf32>
    %128 = arith.mulf %126, %127 : vector<8x256xf32>
    %cst_68 = arith.constant dense<0.000000e+00> : vector<8x256xf32>
    %129 = tpu.matmul %125, %128, %cst_68 {dimension_numbers = #tpu.dot_dimension_numbers<[1], [0], [0], [1], [0, 0, 1, 1], [], []>} : vector<8x8xf32>, vector<8x256xf32>, vector<8x256xf32> -> vector<8x256xf32>
    %130 = arith.addf %124, %129 : vector<8x256xf32>
    %c0_69 = arith.constant 0 : index
    %c16_70 = arith.constant 16 : index
    %131 = vector.load %arg6[%c0_69, %c16_70] : memref<8x72xf32, #tpu.memory_space<vmem>>, vector<8x8xf32>
    %c15_i32_71 = arith.constant 15 : i32
    %132 = tpu.dynamic_rotate %116 by %c15_i32_71 dim 1 : vector<8x256xf32>, i32 -> vector<8x256xf32>
    %133 = vector.broadcast %21 : vector<1x256xf32> to vector<8x256xf32>
    %134 = arith.mulf %132, %133 : vector<8x256xf32>
    %cst_72 = arith.constant dense<0.000000e+00> : vector<8x256xf32>
    %135 = tpu.matmul %131, %134, %cst_72 {dimension_numbers = #tpu.dot_dimension_numbers<[1], [0], [0], [1], [0, 0, 1, 1], [], []>} : vector<8x8xf32>, vector<8x256xf32>, vector<8x256xf32> -> vector<8x256xf32>
    %136 = arith.addf %130, %135 : vector<8x256xf32>
    %c0_73 = arith.constant 0 : index
    %c24_74 = arith.constant 24 : index
    %137 = vector.load %arg6[%c0_73, %c24_74] : memref<8x72xf32, #tpu.memory_space<vmem>>, vector<8x8xf32>
    %c1_i32_75 = arith.constant 1 : i32
    %138 = tpu.dynamic_rotate %116 by %c1_i32_75 dim 1 : vector<8x256xf32>, i32 -> vector<8x256xf32>
    %139 = vector.broadcast %24 : vector<1x256xf32> to vector<8x256xf32>
    %140 = arith.mulf %138, %139 : vector<8x256xf32>
    %cst_76 = arith.constant dense<0.000000e+00> : vector<8x256xf32>
    %141 = tpu.matmul %137, %140, %cst_76 {dimension_numbers = #tpu.dot_dimension_numbers<[1], [0], [0], [1], [0, 0, 1, 1], [], []>} : vector<8x8xf32>, vector<8x256xf32>, vector<8x256xf32> -> vector<8x256xf32>
    %142 = arith.addf %136, %141 : vector<8x256xf32>
    %c0_77 = arith.constant 0 : index
    %c40_78 = arith.constant 40 : index
    %143 = vector.load %arg6[%c0_77, %c40_78] : memref<8x72xf32, #tpu.memory_space<vmem>>, vector<8x8xf32>
    %c255_i32_79 = arith.constant 255 : i32
    %144 = tpu.dynamic_rotate %116 by %c255_i32_79 dim 1 : vector<8x256xf32>, i32 -> vector<8x256xf32>
    %145 = vector.broadcast %27 : vector<1x256xf32> to vector<8x256xf32>
    %146 = arith.mulf %144, %145 : vector<8x256xf32>
    %cst_80 = arith.constant dense<0.000000e+00> : vector<8x256xf32>
    %147 = tpu.matmul %143, %146, %cst_80 {dimension_numbers = #tpu.dot_dimension_numbers<[1], [0], [0], [1], [0, 0, 1, 1], [], []>} : vector<8x8xf32>, vector<8x256xf32>, vector<8x256xf32> -> vector<8x256xf32>
    %148 = arith.addf %142, %147 : vector<8x256xf32>
    %c0_81 = arith.constant 0 : index
    %c48_82 = arith.constant 48 : index
    %149 = vector.load %arg6[%c0_81, %c48_82] : memref<8x72xf32, #tpu.memory_space<vmem>>, vector<8x8xf32>
    %c241_i32_83 = arith.constant 241 : i32
    %150 = tpu.dynamic_rotate %116 by %c241_i32_83 dim 1 : vector<8x256xf32>, i32 -> vector<8x256xf32>
    %151 = vector.broadcast %31 : vector<1x256xf32> to vector<8x256xf32>
    %152 = arith.mulf %150, %151 : vector<8x256xf32>
    %cst_84 = arith.constant dense<0.000000e+00> : vector<8x256xf32>
    %153 = tpu.matmul %149, %152, %cst_84 {dimension_numbers = #tpu.dot_dimension_numbers<[1], [0], [0], [1], [0, 0, 1, 1], [], []>} : vector<8x8xf32>, vector<8x256xf32>, vector<8x256xf32> -> vector<8x256xf32>
    %154 = arith.addf %148, %153 : vector<8x256xf32>
    %c0_85 = arith.constant 0 : index
    %c56_86 = arith.constant 56 : index
    %155 = vector.load %arg6[%c0_85, %c56_86] : memref<8x72xf32, #tpu.memory_space<vmem>>, vector<8x8xf32>
    %c240_i32_87 = arith.constant 240 : i32
    %156 = tpu.dynamic_rotate %116 by %c240_i32_87 dim 1 : vector<8x256xf32>, i32 -> vector<8x256xf32>
    %157 = vector.broadcast %34 : vector<1x256xf32> to vector<8x256xf32>
    %158 = arith.mulf %156, %157 : vector<8x256xf32>
    %cst_88 = arith.constant dense<0.000000e+00> : vector<8x256xf32>
    %159 = tpu.matmul %155, %158, %cst_88 {dimension_numbers = #tpu.dot_dimension_numbers<[1], [0], [0], [1], [0, 0, 1, 1], [], []>} : vector<8x8xf32>, vector<8x256xf32>, vector<8x256xf32> -> vector<8x256xf32>
    %160 = arith.addf %154, %159 : vector<8x256xf32>
    %c0_89 = arith.constant 0 : index
    %c64_90 = arith.constant 64 : index
    %161 = vector.load %arg6[%c0_89, %c64_90] : memref<8x72xf32, #tpu.memory_space<vmem>>, vector<8x8xf32>
    %c239_i32_91 = arith.constant 239 : i32
    %162 = tpu.dynamic_rotate %116 by %c239_i32_91 dim 1 : vector<8x256xf32>, i32 -> vector<8x256xf32>
    %163 = vector.broadcast %38 : vector<1x256xf32> to vector<8x256xf32>
    %164 = arith.mulf %162, %163 : vector<8x256xf32>
    %cst_92 = arith.constant dense<0.000000e+00> : vector<8x256xf32>
    %165 = tpu.matmul %161, %164, %cst_92 {dimension_numbers = #tpu.dot_dimension_numbers<[1], [0], [0], [1], [0, 0, 1, 1], [], []>} : vector<8x8xf32>, vector<8x256xf32>, vector<8x256xf32> -> vector<8x256xf32>
    %166 = arith.addf %160, %165 : vector<8x256xf32>
    %c0_93 = arith.constant 0 : index
    %c0_94 = arith.constant 0 : index
    %167 = vector.load %arg7[%c0_93, %c0_94] : memref<8x1xf32, #tpu.memory_space<vmem>>, vector<8x1xf32>
    %168 = vector.broadcast %167 : vector<8x1xf32> to vector<8x256xf32>
    %169 = arith.addf %166, %168 : vector<8x256xf32>
    %cst_95 = arith.constant 0.000000e+00 : f32
    %170 = vector.broadcast %cst_95 : f32 to vector<8x256xf32>
    %171 = arith.subf %170, %169 : vector<8x256xf32>
    %172 = math.exp %171 : vector<8x256xf32>
    %cst_96 = arith.constant 1.000000e+00 : f32
    %173 = vector.broadcast %cst_96 : f32 to vector<8x256xf32>
    %174 = arith.addf %173, %172 : vector<8x256xf32>
    %cst_97 = arith.constant 1.000000e+00 : f32
    %175 = vector.broadcast %cst_97 : f32 to vector<8x256xf32>
    %176 = arith.divf %175, %174 : vector<8x256xf32>
    %177 = arith.mulf %169, %176 : vector<8x256xf32>
    %c8_98 = arith.constant 8 : index
    %c0_99 = arith.constant 0 : index
    %178 = vector.load %arg15[%c8_98, %c0_99] : memref<32x256xf32, #tpu.memory_space<vmem>>, vector<8x256xf32>
    %179 = arith.addf %177, %178 : vector<8x256xf32>
    %c16_100 = arith.constant 16 : index
    %c0_101 = arith.constant 0 : index
    %180 = vector.load %arg15[%c16_100, %c0_101] : memref<32x256xf32, #tpu.memory_space<vmem>>, vector<8x256xf32>
    tpu.vector_store %arg15[%c16_100, %c0_101], %179 {strides = array<i32>} : memref<32x256xf32, #tpu.memory_space<vmem>>, vector<8x256xf32>,
    %c16_102 = arith.constant 16 : index
    %c0_103 = arith.constant 0 : index
    %181 = vector.load %arg15[%c16_102, %c0_103] : memref<32x256xf32, #tpu.memory_space<vmem>>, vector<8x256xf32>
    %c0_104 = arith.constant 0 : index
    %c32_105 = arith.constant 32 : index
    %182 = vector.load %arg8[%c0_104, %c32_105] : memref<8x72xf32, #tpu.memory_space<vmem>>, vector<8x8xf32>
    %cst_106 = arith.constant dense<0.000000e+00> : vector<8x256xf32>
    %183 = tpu.matmul %182, %181, %cst_106 {dimension_numbers = #tpu.dot_dimension_numbers<[1], [0], [0], [1], [0, 0, 1, 1], [], []>} : vector<8x8xf32>, vector<8x256xf32>, vector<8x256xf32> -> vector<8x256xf32>
    %c0_107 = arith.constant 0 : index
    %c0_108 = arith.constant 0 : index
    %184 = vector.load %arg8[%c0_107, %c0_108] : memref<8x72xf32, #tpu.memory_space<vmem>>, vector<8x8xf32>
    %c17_i32_109 = arith.constant 17 : i32
    %185 = tpu.dynamic_rotate %181 by %c17_i32_109 dim 1 : vector<8x256xf32>, i32 -> vector<8x256xf32>
    %186 = vector.broadcast %14 : vector<1x256xf32> to vector<8x256xf32>
    %187 = arith.mulf %185, %186 : vector<8x256xf32>
    %cst_110 = arith.constant dense<0.000000e+00> : vector<8x256xf32>
    %188 = tpu.matmul %184, %187, %cst_110 {dimension_numbers = #tpu.dot_dimension_numbers<[1], [0], [0], [1], [0, 0, 1, 1], [], []>} : vector<8x8xf32>, vector<8x256xf32>, vector<8x256xf32> -> vector<8x256xf32>
    %189 = arith.addf %183, %188 : vector<8x256xf32>
    %c0_111 = arith.constant 0 : index
    %c8_112 = arith.constant 8 : index
    %190 = vector.load %arg8[%c0_111, %c8_112] : memref<8x72xf32, #tpu.memory_space<vmem>>, vector<8x8xf32>
    %c16_i32_113 = arith.constant 16 : i32
    %191 = tpu.dynamic_rotate %181 by %c16_i32_113 dim 1 : vector<8x256xf32>, i32 -> vector<8x256xf32>
    %192 = vector.broadcast %17 : vector<1x256xf32> to vector<8x256xf32>
    %193 = arith.mulf %191, %192 : vector<8x256xf32>
    %cst_114 = arith.constant dense<0.000000e+00> : vector<8x256xf32>
    %194 = tpu.matmul %190, %193, %cst_114 {dimension_numbers = #tpu.dot_dimension_numbers<[1], [0], [0], [1], [0, 0, 1, 1], [], []>} : vector<8x8xf32>, vector<8x256xf32>, vector<8x256xf32> -> vector<8x256xf32>
    %195 = arith.addf %189, %194 : vector<8x256xf32>
    %c0_115 = arith.constant 0 : index
    %c16_116 = arith.constant 16 : index
    %196 = vector.load %arg8[%c0_115, %c16_116] : memref<8x72xf32, #tpu.memory_space<vmem>>, vector<8x8xf32>
    %c15_i32_117 = arith.constant 15 : i32
    %197 = tpu.dynamic_rotate %181 by %c15_i32_117 dim 1 : vector<8x256xf32>, i32 -> vector<8x256xf32>
    %198 = vector.broadcast %21 : vector<1x256xf32> to vector<8x256xf32>
    %199 = arith.mulf %197, %198 : vector<8x256xf32>
    %cst_118 = arith.constant dense<0.000000e+00> : vector<8x256xf32>
    %200 = tpu.matmul %196, %199, %cst_118 {dimension_numbers = #tpu.dot_dimension_numbers<[1], [0], [0], [1], [0, 0, 1, 1], [], []>} : vector<8x8xf32>, vector<8x256xf32>, vector<8x256xf32> -> vector<8x256xf32>
    %201 = arith.addf %195, %200 : vector<8x256xf32>
    %c0_119 = arith.constant 0 : index
    %c24_120 = arith.constant 24 : index
    %202 = vector.load %arg8[%c0_119, %c24_120] : memref<8x72xf32, #tpu.memory_space<vmem>>, vector<8x8xf32>
    %c1_i32_121 = arith.constant 1 : i32
    %203 = tpu.dynamic_rotate %181 by %c1_i32_121 dim 1 : vector<8x256xf32>, i32 -> vector<8x256xf32>
    %204 = vector.broadcast %24 : vector<1x256xf32> to vector<8x256xf32>
    %205 = arith.mulf %203, %204 : vector<8x256xf32>
    %cst_122 = arith.constant dense<0.000000e+00> : vector<8x256xf32>
    %206 = tpu.matmul %202, %205, %cst_122 {dimension_numbers = #tpu.dot_dimension_numbers<[1], [0], [0], [1], [0, 0, 1, 1], [], []>} : vector<8x8xf32>, vector<8x256xf32>, vector<8x256xf32> -> vector<8x256xf32>
    %207 = arith.addf %201, %206 : vector<8x256xf32>
    %c0_123 = arith.constant 0 : index
    %c40_124 = arith.constant 40 : index
    %208 = vector.load %arg8[%c0_123, %c40_124] : memref<8x72xf32, #tpu.memory_space<vmem>>, vector<8x8xf32>
    %c255_i32_125 = arith.constant 255 : i32
    %209 = tpu.dynamic_rotate %181 by %c255_i32_125 dim 1 : vector<8x256xf32>, i32 -> vector<8x256xf32>
    %210 = vector.broadcast %27 : vector<1x256xf32> to vector<8x256xf32>
    %211 = arith.mulf %209, %210 : vector<8x256xf32>
    %cst_126 = arith.constant dense<0.000000e+00> : vector<8x256xf32>
    %212 = tpu.matmul %208, %211, %cst_126 {dimension_numbers = #tpu.dot_dimension_numbers<[1], [0], [0], [1], [0, 0, 1, 1], [], []>} : vector<8x8xf32>, vector<8x256xf32>, vector<8x256xf32> -> vector<8x256xf32>
    %213 = arith.addf %207, %212 : vector<8x256xf32>
    %c0_127 = arith.constant 0 : index
    %c48_128 = arith.constant 48 : index
    %214 = vector.load %arg8[%c0_127, %c48_128] : memref<8x72xf32, #tpu.memory_space<vmem>>, vector<8x8xf32>
    %c241_i32_129 = arith.constant 241 : i32
    %215 = tpu.dynamic_rotate %181 by %c241_i32_129 dim 1 : vector<8x256xf32>, i32 -> vector<8x256xf32>
    %216 = vector.broadcast %31 : vector<1x256xf32> to vector<8x256xf32>
    %217 = arith.mulf %215, %216 : vector<8x256xf32>
    %cst_130 = arith.constant dense<0.000000e+00> : vector<8x256xf32>
    %218 = tpu.matmul %214, %217, %cst_130 {dimension_numbers = #tpu.dot_dimension_numbers<[1], [0], [0], [1], [0, 0, 1, 1], [], []>} : vector<8x8xf32>, vector<8x256xf32>, vector<8x256xf32> -> vector<8x256xf32>
    %219 = arith.addf %213, %218 : vector<8x256xf32>
    %c0_131 = arith.constant 0 : index
    %c56_132 = arith.constant 56 : index
    %220 = vector.load %arg8[%c0_131, %c56_132] : memref<8x72xf32, #tpu.memory_space<vmem>>, vector<8x8xf32>
    %c240_i32_133 = arith.constant 240 : i32
    %221 = tpu.dynamic_rotate %181 by %c240_i32_133 dim 1 : vector<8x256xf32>, i32 -> vector<8x256xf32>
    %222 = vector.broadcast %34 : vector<1x256xf32> to vector<8x256xf32>
    %223 = arith.mulf %221, %222 : vector<8x256xf32>
    %cst_134 = arith.constant dense<0.000000e+00> : vector<8x256xf32>
    %224 = tpu.matmul %220, %223, %cst_134 {dimension_numbers = #tpu.dot_dimension_numbers<[1], [0], [0], [1], [0, 0, 1, 1], [], []>} : vector<8x8xf32>, vector<8x256xf32>, vector<8x256xf32> -> vector<8x256xf32>
    %225 = arith.addf %219, %224 : vector<8x256xf32>
    %c0_135 = arith.constant 0 : index
    %c64_136 = arith.constant 64 : index
    %226 = vector.load %arg8[%c0_135, %c64_136] : memref<8x72xf32, #tpu.memory_space<vmem>>, vector<8x8xf32>
    %c239_i32_137 = arith.constant 239 : i32
    %227 = tpu.dynamic_rotate %181 by %c239_i32_137 dim 1 : vector<8x256xf32>, i32 -> vector<8x256xf32>
    %228 = vector.broadcast %38 : vector<1x256xf32> to vector<8x256xf32>
    %229 = arith.mulf %227, %228 : vector<8x256xf32>
    %cst_138 = arith.constant dense<0.000000e+00> : vector<8x256xf32>
    %230 = tpu.matmul %226, %229, %cst_138 {dimension_numbers = #tpu.dot_dimension_numbers<[1], [0], [0], [1], [0, 0, 1, 1], [], []>} : vector<8x8xf32>, vector<8x256xf32>, vector<8x256xf32> -> vector<8x256xf32>
    %231 = arith.addf %225, %230 : vector<8x256xf32>
    %c0_139 = arith.constant 0 : index
    %c0_140 = arith.constant 0 : index
    %232 = vector.load %arg9[%c0_139, %c0_140] : memref<8x1xf32, #tpu.memory_space<vmem>>, vector<8x1xf32>
    %233 = vector.broadcast %232 : vector<8x1xf32> to vector<8x256xf32>
    %234 = arith.addf %231, %233 : vector<8x256xf32>
    %cst_141 = arith.constant 0.000000e+00 : f32
    %235 = vector.broadcast %cst_141 : f32 to vector<8x256xf32>
    %236 = arith.subf %235, %234 : vector<8x256xf32>
    %237 = math.exp %236 : vector<8x256xf32>
    %cst_142 = arith.constant 1.000000e+00 : f32
    %238 = vector.broadcast %cst_142 : f32 to vector<8x256xf32>
    %239 = arith.addf %238, %237 : vector<8x256xf32>
    %cst_143 = arith.constant 1.000000e+00 : f32
    %240 = vector.broadcast %cst_143 : f32 to vector<8x256xf32>
    %241 = arith.divf %240, %239 : vector<8x256xf32>
    %242 = arith.mulf %234, %241 : vector<8x256xf32>
    %c0_144 = arith.constant 0 : index
    %c32_145 = arith.constant 32 : index
    %243 = vector.load %arg10[%c0_144, %c32_145] : memref<8x72xf32, #tpu.memory_space<vmem>>, vector<8x8xf32>
    %cst_146 = arith.constant dense<0.000000e+00> : vector<8x256xf32>
    %244 = tpu.matmul %243, %242, %cst_146 {dimension_numbers = #tpu.dot_dimension_numbers<[1], [0], [0], [1], [0, 0, 1, 1], [], []>} : vector<8x8xf32>, vector<8x256xf32>, vector<8x256xf32> -> vector<8x256xf32>
    %c0_147 = arith.constant 0 : index
    %c0_148 = arith.constant 0 : index
    %245 = vector.load %arg10[%c0_147, %c0_148] : memref<8x72xf32, #tpu.memory_space<vmem>>, vector<8x8xf32>
    %c17_i32_149 = arith.constant 17 : i32
    %246 = tpu.dynamic_rotate %242 by %c17_i32_149 dim 1 : vector<8x256xf32>, i32 -> vector<8x256xf32>
    %247 = vector.broadcast %14 : vector<1x256xf32> to vector<8x256xf32>
    %248 = arith.mulf %246, %247 : vector<8x256xf32>
    %cst_150 = arith.constant dense<0.000000e+00> : vector<8x256xf32>
    %249 = tpu.matmul %245, %248, %cst_150 {dimension_numbers = #tpu.dot_dimension_numbers<[1], [0], [0], [1], [0, 0, 1, 1], [], []>} : vector<8x8xf32>, vector<8x256xf32>, vector<8x256xf32> -> vector<8x256xf32>
    %250 = arith.addf %244, %249 : vector<8x256xf32>
    %c0_151 = arith.constant 0 : index
    %c8_152 = arith.constant 8 : index
    %251 = vector.load %arg10[%c0_151, %c8_152] : memref<8x72xf32, #tpu.memory_space<vmem>>, vector<8x8xf32>
    %c16_i32_153 = arith.constant 16 : i32
    %252 = tpu.dynamic_rotate %242 by %c16_i32_153 dim 1 : vector<8x256xf32>, i32 -> vector<8x256xf32>
    %253 = vector.broadcast %17 : vector<1x256xf32> to vector<8x256xf32>
    %254 = arith.mulf %252, %253 : vector<8x256xf32>
    %cst_154 = arith.constant dense<0.000000e+00> : vector<8x256xf32>
    %255 = tpu.matmul %251, %254, %cst_154 {dimension_numbers = #tpu.dot_dimension_numbers<[1], [0], [0], [1], [0, 0, 1, 1], [], []>} : vector<8x8xf32>, vector<8x256xf32>, vector<8x256xf32> -> vector<8x256xf32>
    %256 = arith.addf %250, %255 : vector<8x256xf32>
    %c0_155 = arith.constant 0 : index
    %c16_156 = arith.constant 16 : index
    %257 = vector.load %arg10[%c0_155, %c16_156] : memref<8x72xf32, #tpu.memory_space<vmem>>, vector<8x8xf32>
    %c15_i32_157 = arith.constant 15 : i32
    %258 = tpu.dynamic_rotate %242 by %c15_i32_157 dim 1 : vector<8x256xf32>, i32 -> vector<8x256xf32>
    %259 = vector.broadcast %21 : vector<1x256xf32> to vector<8x256xf32>
    %260 = arith.mulf %258, %259 : vector<8x256xf32>
    %cst_158 = arith.constant dense<0.000000e+00> : vector<8x256xf32>
    %261 = tpu.matmul %257, %260, %cst_158 {dimension_numbers = #tpu.dot_dimension_numbers<[1], [0], [0], [1], [0, 0, 1, 1], [], []>} : vector<8x8xf32>, vector<8x256xf32>, vector<8x256xf32> -> vector<8x256xf32>
    %262 = arith.addf %256, %261 : vector<8x256xf32>
    %c0_159 = arith.constant 0 : index
    %c24_160 = arith.constant 24 : index
    %263 = vector.load %arg10[%c0_159, %c24_160] : memref<8x72xf32, #tpu.memory_space<vmem>>, vector<8x8xf32>
    %c1_i32_161 = arith.constant 1 : i32
    %264 = tpu.dynamic_rotate %242 by %c1_i32_161 dim 1 : vector<8x256xf32>, i32 -> vector<8x256xf32>
    %265 = vector.broadcast %24 : vector<1x256xf32> to vector<8x256xf32>
    %266 = arith.mulf %264, %265 : vector<8x256xf32>
    %cst_162 = arith.constant dense<0.000000e+00> : vector<8x256xf32>
    %267 = tpu.matmul %263, %266, %cst_162 {dimension_numbers = #tpu.dot_dimension_numbers<[1], [0], [0], [1], [0, 0, 1, 1], [], []>} : vector<8x8xf32>, vector<8x256xf32>, vector<8x256xf32> -> vector<8x256xf32>
    %268 = arith.addf %262, %267 : vector<8x256xf32>
    %c0_163 = arith.constant 0 : index
    %c40_164 = arith.constant 40 : index
    %269 = vector.load %arg10[%c0_163, %c40_164] : memref<8x72xf32, #tpu.memory_space<vmem>>, vector<8x8xf32>
    %c255_i32_165 = arith.constant 255 : i32
    %270 = tpu.dynamic_rotate %242 by %c255_i32_165 dim 1 : vector<8x256xf32>, i32 -> vector<8x256xf32>
    %271 = vector.broadcast %27 : vector<1x256xf32> to vector<8x256xf32>
    %272 = arith.mulf %270, %271 : vector<8x256xf32>
    %cst_166 = arith.constant dense<0.000000e+00> : vector<8x256xf32>
    %273 = tpu.matmul %269, %272, %cst_166 {dimension_numbers = #tpu.dot_dimension_numbers<[1], [0], [0], [1], [0, 0, 1, 1], [], []>} : vector<8x8xf32>, vector<8x256xf32>, vector<8x256xf32> -> vector<8x256xf32>
    %274 = arith.addf %268, %273 : vector<8x256xf32>
    %c0_167 = arith.constant 0 : index
    %c48_168 = arith.constant 48 : index
    %275 = vector.load %arg10[%c0_167, %c48_168] : memref<8x72xf32, #tpu.memory_space<vmem>>, vector<8x8xf32>
    %c241_i32_169 = arith.constant 241 : i32
    %276 = tpu.dynamic_rotate %242 by %c241_i32_169 dim 1 : vector<8x256xf32>, i32 -> vector<8x256xf32>
    %277 = vector.broadcast %31 : vector<1x256xf32> to vector<8x256xf32>
    %278 = arith.mulf %276, %277 : vector<8x256xf32>
    %cst_170 = arith.constant dense<0.000000e+00> : vector<8x256xf32>
    %279 = tpu.matmul %275, %278, %cst_170 {dimension_numbers = #tpu.dot_dimension_numbers<[1], [0], [0], [1], [0, 0, 1, 1], [], []>} : vector<8x8xf32>, vector<8x256xf32>, vector<8x256xf32> -> vector<8x256xf32>
    %280 = arith.addf %274, %279 : vector<8x256xf32>
    %c0_171 = arith.constant 0 : index
    %c56_172 = arith.constant 56 : index
    %281 = vector.load %arg10[%c0_171, %c56_172] : memref<8x72xf32, #tpu.memory_space<vmem>>, vector<8x8xf32>
    %c240_i32_173 = arith.constant 240 : i32
    %282 = tpu.dynamic_rotate %242 by %c240_i32_173 dim 1 : vector<8x256xf32>, i32 -> vector<8x256xf32>
    %283 = vector.broadcast %34 : vector<1x256xf32> to vector<8x256xf32>
    %284 = arith.mulf %282, %283 : vector<8x256xf32>
    %cst_174 = arith.constant dense<0.000000e+00> : vector<8x256xf32>
    %285 = tpu.matmul %281, %284, %cst_174 {dimension_numbers = #tpu.dot_dimension_numbers<[1], [0], [0], [1], [0, 0, 1, 1], [], []>} : vector<8x8xf32>, vector<8x256xf32>, vector<8x256xf32> -> vector<8x256xf32>
    %286 = arith.addf %280, %285 : vector<8x256xf32>
    %c0_175 = arith.constant 0 : index
    %c64_176 = arith.constant 64 : index
    %287 = vector.load %arg10[%c0_175, %c64_176] : memref<8x72xf32, #tpu.memory_space<vmem>>, vector<8x8xf32>
    %c239_i32_177 = arith.constant 239 : i32
    %288 = tpu.dynamic_rotate %242 by %c239_i32_177 dim 1 : vector<8x256xf32>, i32 -> vector<8x256xf32>
    %289 = vector.broadcast %38 : vector<1x256xf32> to vector<8x256xf32>
    %290 = arith.mulf %288, %289 : vector<8x256xf32>
    %cst_178 = arith.constant dense<0.000000e+00> : vector<8x256xf32>
    %291 = tpu.matmul %287, %290, %cst_178 {dimension_numbers = #tpu.dot_dimension_numbers<[1], [0], [0], [1], [0, 0, 1, 1], [], []>} : vector<8x8xf32>, vector<8x256xf32>, vector<8x256xf32> -> vector<8x256xf32>
    %292 = arith.addf %286, %291 : vector<8x256xf32>
    %c0_179 = arith.constant 0 : index
    %c0_180 = arith.constant 0 : index
    %293 = vector.load %arg11[%c0_179, %c0_180] : memref<8x1xf32, #tpu.memory_space<vmem>>, vector<8x1xf32>
    %294 = vector.broadcast %293 : vector<8x1xf32> to vector<8x256xf32>
    %295 = arith.addf %292, %294 : vector<8x256xf32>
    %cst_181 = arith.constant 0.000000e+00 : f32
    %296 = vector.broadcast %cst_181 : f32 to vector<8x256xf32>
    %297 = arith.subf %296, %295 : vector<8x256xf32>
    %298 = math.exp %297 : vector<8x256xf32>
    %cst_182 = arith.constant 1.000000e+00 : f32
    %299 = vector.broadcast %cst_182 : f32 to vector<8x256xf32>
    %300 = arith.addf %299, %298 : vector<8x256xf32>
    %cst_183 = arith.constant 1.000000e+00 : f32
    %301 = vector.broadcast %cst_183 : f32 to vector<8x256xf32>
    %302 = arith.divf %301, %300 : vector<8x256xf32>
    %303 = arith.mulf %295, %302 : vector<8x256xf32>
    %c16_184 = arith.constant 16 : index
    %c0_185 = arith.constant 0 : index
    %304 = vector.load %arg15[%c16_184, %c0_185] : memref<32x256xf32, #tpu.memory_space<vmem>>, vector<8x256xf32>
    %305 = arith.addf %303, %304 : vector<8x256xf32>
    %c24_186 = arith.constant 24 : index
    %c0_187 = arith.constant 0 : index
    %306 = vector.load %arg15[%c24_186, %c0_187] : memref<32x256xf32, #tpu.memory_space<vmem>>, vector<8x256xf32>
    tpu.vector_store %arg15[%c24_186, %c0_187], %305 {strides = array<i32>} : memref<32x256xf32, #tpu.memory_space<vmem>>, vector<8x256xf32>,
    %c0_188 = arith.constant 0 : index
    %c0_189 = arith.constant 0 : index
    %307 = vector.load %arg12[%c0_188, %c0_189] : memref<16x32xf32, #tpu.memory_space<vmem>>, vector<16x32xf32>
    %c0_190 = arith.constant 0 : index
    %c0_191 = arith.constant 0 : index
    %308 = vector.load %arg15[%c0_190, %c0_191] : memref<32x256xf32, #tpu.memory_space<vmem>>, vector<32x256xf32>
    %cst_192 = arith.constant dense<0.000000e+00> : vector<16x256xf32>
    %309 = tpu.matmul %307, %308, %cst_192 {dimension_numbers = #tpu.dot_dimension_numbers<[1], [0], [0], [1], [0, 0, 1, 1], [], []>} : vector<16x32xf32>, vector<32x256xf32>, vector<16x256xf32> -> vector<16x256xf32>
    %c0_193 = arith.constant 0 : index
    %c0_194 = arith.constant 0 : index
    %310 = vector.load %arg13[%c0_193, %c0_194] : memref<16x1xf32, #tpu.memory_space<vmem>>, vector<16x1xf32>
    %311 = vector.broadcast %310 : vector<16x1xf32> to vector<16x256xf32>
    %312 = arith.addf %309, %311 : vector<16x256xf32>
    %cst_195 = arith.constant 0.000000e+00 : f32
    %313 = vector.broadcast %cst_195 : f32 to vector<16x256xf32>
    %314 = arith.subf %313, %312 : vector<16x256xf32>
    %315 = math.exp %314 : vector<16x256xf32>
    %cst_196 = arith.constant 1.000000e+00 : f32
    %316 = vector.broadcast %cst_196 : f32 to vector<16x256xf32>
    %317 = arith.addf %316, %315 : vector<16x256xf32>
    %cst_197 = arith.constant 1.000000e+00 : f32
    %318 = vector.broadcast %cst_197 : f32 to vector<16x256xf32>
    %319 = arith.divf %318, %317 : vector<16x256xf32>
    %320 = arith.mulf %312, %319 : vector<16x256xf32>
    %c0_198 = arith.constant 0 : index
    %c0_199 = arith.constant 0 : index
    %c0_200 = arith.constant 0 : index
    %321 = vector.load %arg14[%c0_198, %c0_199, %c0_200] : memref<1x16x256xf32, #tpu.memory_space<vmem>>, vector<1x16x256xf32>
    %322 = vector.shape_cast %321 : vector<1x16x256xf32> to vector<16x256xf32>
    %323 = vector.shape_cast %320 : vector<16x256xf32> to vector<1x16x256xf32>
    tpu.vector_store %arg14[%c0_198, %c0_199, %c0_200], %323 {strides = array<i32>} : memref<1x16x256xf32, #tpu.memory_space<vmem>>, vector<1x16x256xf32>,
    return
  }
  func.func @transform_0(%arg0: i32) -> (i32, i32, i32) {
    %c0_i32 = arith.constant 0 : i32
    %c0_i32_0 = arith.constant 0 : i32
    %c0_i32_1 = arith.constant 0 : i32
    return %arg0, %c0_i32, %c0_i32_0 : i32, i32, i32
  }
  func.func @transform_1(%arg0: i32) -> (i32, i32) {
    %c0_i32 = arith.constant 0 : i32
    %c0_i32_0 = arith.constant 0 : i32
    %c0_i32_1 = arith.constant 0 : i32
    return %c0_i32, %c0_i32_0 : i32, i32
  }
  func.func @transform_2(%arg0: i32) -> (i32, i32) {
    %c0_i32 = arith.constant 0 : i32
    %c0_i32_0 = arith.constant 0 : i32
    %c0_i32_1 = arith.constant 0 : i32
    return %c0_i32, %c0_i32_0 : i32, i32
  }
  func.func @transform_3(%arg0: i32) -> (i32, i32) {
    %c0_i32 = arith.constant 0 : i32
    %c0_i32_0 = arith.constant 0 : i32
    %c0_i32_1 = arith.constant 0 : i32
    return %c0_i32, %c0_i32_0 : i32, i32
  }
  func.func @transform_4(%arg0: i32) -> (i32, i32) {
    %c0_i32 = arith.constant 0 : i32
    %c0_i32_0 = arith.constant 0 : i32
    %c0_i32_1 = arith.constant 0 : i32
    return %c0_i32, %c0_i32_0 : i32, i32
  }
  func.func @transform_5(%arg0: i32) -> (i32, i32) {
    %c0_i32 = arith.constant 0 : i32
    %c0_i32_0 = arith.constant 0 : i32
    %c0_i32_1 = arith.constant 0 : i32
    return %c0_i32, %c0_i32_0 : i32, i32
  }
  func.func @transform_6(%arg0: i32) -> (i32, i32) {
    %c0_i32 = arith.constant 0 : i32
    %c0_i32_0 = arith.constant 0 : i32
    %c0_i32_1 = arith.constant 0 : i32
    return %c0_i32, %c0_i32_0 : i32, i32
  }
  func.func @transform_7(%arg0: i32) -> (i32, i32) {
    %c0_i32 = arith.constant 0 : i32
    %c0_i32_0 = arith.constant 0 : i32
    %c0_i32_1 = arith.constant 0 : i32
    return %c0_i32, %c0_i32_0 : i32, i32
  }
  func.func @transform_8(%arg0: i32) -> (i32, i32) {
    %c0_i32 = arith.constant 0 : i32
    %c0_i32_0 = arith.constant 0 : i32
    %c0_i32_1 = arith.constant 0 : i32
    return %c0_i32, %c0_i32_0 : i32, i32
  }
  func.func @transform_9(%arg0: i32) -> (i32, i32) {
    %c0_i32 = arith.constant 0 : i32
    %c0_i32_0 = arith.constant 0 : i32
    %c0_i32_1 = arith.constant 0 : i32
    return %c0_i32, %c0_i32_0 : i32, i32
  }
  func.func @transform_10(%arg0: i32) -> (i32, i32) {
    %c0_i32 = arith.constant 0 : i32
    %c0_i32_0 = arith.constant 0 : i32
    %c0_i32_1 = arith.constant 0 : i32
    return %c0_i32, %c0_i32_0 : i32, i32
  }
  func.func @transform_11(%arg0: i32) -> (i32, i32) {
    %c0_i32 = arith.constant 0 : i32
    %c0_i32_0 = arith.constant 0 : i32
    %c0_i32_1 = arith.constant 0 : i32
    return %c0_i32, %c0_i32_0 : i32, i32
  }
  func.func @transform_12(%arg0: i32) -> (i32, i32) {
    %c0_i32 = arith.constant 0 : i32
    %c0_i32_0 = arith.constant 0 : i32
    %c0_i32_1 = arith.constant 0 : i32
    return %c0_i32, %c0_i32_0 : i32, i32
  }
  func.func @transform_13(%arg0: i32) -> (i32, i32, i32) {
    %c0_i32 = arith.constant 0 : i32
    %c0_i32_0 = arith.constant 0 : i32
    %c0_i32_1 = arith.constant 0 : i32
    return %arg0, %c0_i32, %c0_i32_0 : i32, i32, i32
  }
}

</mosaic_0001>

<bundles_post_ra>
// kernel: _lambda_.1
= control target key start
LH: loop header
LB: loop body
LE: loop exit
PB: predicated region body
PF: predicated region fallthrough
CT: control target
= control target key end

     0   :  { %s4165_s25 = smov 0   ;;  %s4812_s0 = inlined_call_operand.vmem [shape: f32[2,16,256], index: 0, kind: input, shape index: {}]   ;;  %s4813_s1 = inlined_call_operand.vmem [shape: f32[16,16], index: 1, kind: input, shape index: {}]   ;;  %s4814_s2 = inlined_call_operand.vmem [shape: f32[16,1], index: 2, kind: input, shape index: {}]   ;;  %s4815_s3 = inlined_call_operand.vmem [shape: f32[8,72], index: 3, kind: input, shape index: {}]   ;;  %s4816_s4 = inlined_call_operand.vmem [shape: f32[8,1], index: 4, kind: input, shape index: {}]   ;;  %s4817_s5 = inlined_call_operand.vmem [shape: f32[8,72], index: 5, kind: input, shape index: {}]   ;;  %s4818_s6 = inlined_call_operand.vmem [shape: f32[8,1], index: 6, kind: input, shape index: {}]   ;;  %s4819_s7 = inlined_call_operand.vmem [shape: f32[8,72], index: 7, kind: input, shape index: {}]   ;;  %s4820_s8 = inlined_call_operand.vmem [shape: f32[8,1], index: 8, kind: input, shape index: {}]   ;;  %s4821_s9 = inlined_call_operand.vmem [shape: f32[8,72], index: 9, kind: input, shape index: {}]   ;;  %s4822_s10 = inlined_call_operand.vmem [shape: f32[8,1], index: 10, kind: input, shape index: {}]   ;;  %s4823_s11 = inlined_call_operand.vmem [shape: f32[16,32], index: 11, kind: input, shape index: {}]   ;;  %s4824_s12 = inlined_call_operand.vmem [shape: f32[16,1], index: 12, kind: input, shape index: {}]   ;;  %s4825_s13 = inlined_call_operand.vmem [shape: f32[2,16,256], index: 13, kind: output, shape index: {}]  }
   0x1 LB: > { %s3926_s26 = sadd.s32 4294967295, %s4076_s25   ;;  %p3930_p0 = scmp.ge.s32.totalorder %s4076_s25, 1  ;;  %s4076_s25 = sphi %s4165_s25, %s23_s25  }
   0x2   : > { %p387_p1 = scmp.lt.s32.totalorder %s4076_s25, 3 }
   0x4   : > { %p388_p2 = pnand %p3930_p0, %p387_p1 }
   0x5   : > { %p431_p3 = scmp.lt.s32.totalorder (!%p388_p2), %s3926_s26, 1  ;;  %s4080_s22 = smov (!%p388_p2), 96  }
   0x6   : > { %391 = sbr.rel (%p388_p2) target bundleno = 2042 (0x7fa), region = 72  ;;  %s4081_s23 = smov (!%p388_p2), 112  }
   0x7   : > { %s4082_s24 = smov (!%p388_p2), 120   ;;  %s4833_s27 = smov (!%p388_p2), 88  }
   0x8   : > { %s4084_s28 = smov (!%p388_p2), 104   ;;  %s4839_s30 = smov (!%p388_p2), 127  }
   0x9   : > { %s4831_s14 = smov (!%p388_p2), 17   ;;  %s4827_s16 = smov (!%p388_p2), 15  }
   0xa   : > { %s4837_s17 = smov (!%p388_p2), 1   ;;  %s4090_s18 = smov (!%p388_p2), 113  }
   0xb   : > { %v4078_v0 = vmov 0.0   ;;  %v4079_v1 = vmov 0   ;;  %v485_v2 = vld [vmem:[%s4814_s2 + $0x8] sm:$0xff]  ;;  %s4858_s26 = smov (!%p431_p3, %s3926_s26), 1  ;;  %v482_v7 = vld [vmem:[%s4813_s1] sm:$0xff]  ;;  %vm496_vm0 = vcmask 130048   ;;  %v441_v33 = vlaneseq }
   0xc   : > { %567 = vmatprep.mubr.f32.mxu0 %v4078_v0  ;;  %4004 = vset.pattern.permute.xlu0 %v4079_v1  ;;  %s4826_s29 = sshll.u32 %s4858_s26, 5  ;;  %v483_v8 = vld [vmem:[%s4813_s1 + $0x8] sm:$0xff]  ;;  %v4197_v9 = vld [vmem:[%s4815_s3] sm:$0xff]  ;;  %vm624_vm1 = vcmask 64512   ;;  %s4091_s19 = smov 111  }
   0xd   : > { %493 = vperm.xlu0 %4004, %v485_v2   ;;  %767 = vmatprep.mubr.f32.mxu1 %v4078_v0  ;;  %s435_s15 = scalar_lea.vmem %s4812_s0, %s4826_s29  ;;  %s4092_s20 = smov 80   ;;  %v1376_v30 = vld [vmem:[%s4816_s4] sm:$0xff]  ;;  %v4264_v34 = vand.u32 127, %v441_v33 }
   0xe   : > { %4005 = vset.pattern.permute.xlu1 %v4079_v1  ;;  %v481_v3 = vld [vmem:[%s435_s15 + $0x18] sm:$0xff]  ;;  %v480_v4 = vld [vmem:[%s435_s15 + $0x10] sm:$0xff]  ;;  %v479_v5 = vld [vmem:[%s435_s15 + $0x8] sm:$0xff]  ;;  %s4093_s21 = smov 72   ;;  %s4849_s29 = smov 16  }
   0xf   : > { %531 = vmatprep.subr.mxu0 %v481_v3  ;;  %v478_v6 = vld [vmem:[%s435_s15] sm:$0xff]  ;;  %699 = vrot.lane.b32.xlu1 %v4197_v9, %s4080_s22  ;;  %s4829_s15 = smov 16   ;;  %v4271_v37 = vadd.s32 128, %v4264_v34  ;;  %v444_v38 = vand.u32 15, %v4264_v34  ;;  %vm446_vm2 = vcmp.ge.s32.totalorder %v4264_v34, 16  ;;  %vm619_vm6 = vcmp.lt.s32.totalorder %v4264_v34, 17 }
  0x10   : > { %532 = vmatpush1.msra.mxu0 %v480_v4  ;;  %vm778_vm8 = vcmp.lt.s32.totalorder %v4264_v34, 16  ;;  %v4315_v55 = vsel %vm446_vm2, 1.0, %v4078_v0  ;;  %vm864_vm11 = vcmp.lt.s32.totalorder %v4264_v34, 15  ;;  %vm950_vm13 = vcmp.lt.s32.totalorder %v4264_v34, 1 }
  0x11   : > { %533 = vmatprep.subr.mxu0 %v479_v5  ;;  %783 = vrot.lane.b32.xlu0 %v4197_v9, %s4082_s24  ;;  %v445_v41 = vand.u32 15, %v4271_v37  ;;  %vm4278_vm3 = vcmp.ge.s32.totalorder %v444_v38, 1  ;;  %vm4305_vm7 = vcmp.lt.s32.totalorder %v444_v38, 15  ;;  %vm449_vm12 = vcmp.lt.s32.totalorder %v4271_v37, 240 }
  0x12   : > { %534 = vmatpush1.msra.mxu0 %v478_v6  ;;  %vm454_vm5 = vmand %vm446_vm2, %vm4278_vm3  ;;  %vm1122_vm15 = vcmp.lt.s32.totalorder %v4264_v34, 113 }
  0x13   : > { %3935 = vmatmul.mubr.msk.f32.vlgmr.msra.gmra.mxu0 %vm496_vm0, %v482_v7  ;;  %869 = vrot.lane.b32.xlu1 %v4197_v9, %s4081_s23  ;;  %vm4284_vm4 = vcmp.ge.s32.totalorder %v445_v41, 1  ;;  %v4294_v46 = vsel %vm454_vm5, 1.0, %v4078_v0  ;;  %vm4317_vm9 = vcmp.lt.s32.totalorder %v445_v41, 15  ;;  %vm460_vm10 = vmand %vm446_vm2, %vm4305_vm7  ;;  %v4355_v7 = vsel %vm4278_vm3, 1.0, %v4078_v0 }
  0x14   : > { %573 = vmatprep.mubr.f32.mxu0 %v4078_v0  ;;  %v4299_v47 = vsel %vm4284_vm4, 1.0, %v4078_v0  ;;  %v4334_v62 = vsel %vm460_vm10, 1.0, %v4078_v0  ;;  %v4339_v63 = vsel %vm4317_vm9, 1.0, %v4078_v0  ;;  %vm469_vm14 = vmand %vm449_vm12, %vm4284_vm4  ;;  %vm1294_vm3 = vcmp.lt.s32.totalorder %v4264_v34, 111 }
  0x15   : > { %955 = vrot.lane.b32.xlu0 %v4197_v9, %s4084_s28  ;;  %vm475_vm2 = vmand %vm449_vm12, %vm4317_vm9  ;;  %vm1208_vm4 = vcmp.lt.s32.totalorder %v4264_v34, 112 }
  0x17   : > { %3936 = vmatmul.mubr.msk.f32.gmra.mxu0 %vm496_vm0, %v483_v8  ;;  %1041 = vrot.lane.b32.xlu1 %v4197_v9, %s4833_s27  ;;  %vm1036_vm0 = vcmp.lt.s32.totalorder %v4264_v34, 127 }
  0x18   : > { %692 = vmatprep.mubr.f32.mxu0 %v4078_v0 }
  0x81   : > { %v700_v29 = vpop.permute.xlu1 %699 }
  0x85   : > { %v4262_v31 = vpop.permute.xlu1 %869 }
  0x88   : > { %v494_v12 = vpop.permute.xlu0 %493 }
  0x89   : > { %v4266_v35 = vpop.permute.xlu1 %1041 }
  0x8c   : > { %v784_v32 = vpop.permute.xlu0 %783 }
  0x90   : > { %v4268_v36 = vpop.permute.xlu0 %955 }
  0xd3   : > { %v4209_v10 = vpop.f32.mrf.mxu0 }
  0xd5   : > { %v4211_v11 = vpop.f32.mrf.mxu0 }
  0xd7   : > { %v575_v13 = vpop.f32.mrf.mxu0 }
  0xd8   : > { %v576_v14 = vadd.f32 %v575_v13, %v494_v12 }
  0xd9   : > { %v577_v15 = vpop.f32.mrf.mxu0 }
  0xda   : > { %v582_v16 = vsub.f32 0.0, %v576_v14  ;;  %v578_v17 = vadd.f32 %v577_v15, %v494_v12 }
  0xdc   : > { %v588_v18 = vmul.f32 1.442695, %v582_v16  ;;  %v583_v19 = vsub.f32 0.0, %v578_v17  ;;  %v4374_v16 = vsel %vm4305_vm7, 1.0, %v4078_v0 }
  0xde   : > { %4006 = vpow2.f32 %v588_v18  ;;  %v590_v20 = vmul.f32 1.442695, %v583_v19 }
  0xe0   : > { %4008 = vpow2.f32 %v590_v20 }
  0xeb   : > { %v4007_v21 = vpop.eup %4006 }
  0xec   : > { %v594_v22 = vadd.f32 1.0, %v4007_v21 }
  0xed   : > { %v4009_v23 = vpop.eup %4008 }
  0xee   : > { %4010 = vrcp.f32 %v594_v22  ;;  %v595_v24 = vadd.f32 1.0, %v4009_v23 }
  0xf0   : > { %4012 = vrcp.f32 %v595_v24 }
  0xfb   : > { %v4011_v25 = vpop.eup %4010 }
  0xfc   : > { %v4213_v26 = vmul.f32 %v4011_v25, %v576_v14 }
  0xfd   : > { %v4013_v27 = vpop.eup %4012 }
  0xfe   : > { %v4215_v28 = vmul.f32 %v4013_v27, %v578_v17  ;;  %1032 = vrot.lane.b32.xlu1 %v4213_v26, %s4839_s30  ;;  %615 = vrot.lane.b32.xlu0 %v4213_v26, %s4831_s14  ;;  %v4377_v17 = vsel %vm469_vm14, 1.0, %v4078_v0 }
 0x100   : > { %733 = vmatprep.subr.mxu1 %v4215_v28 }
 0x101   : > { %734 = vmatpush1.msra.mxu1 %v4213_v26 }
 0x102   : > { %1204 = vrot.lane.b32.xlu1 %v4213_v26, %s4081_s23  ;;  %774 = vrot.lane.b32.xlu0 %v4213_v26, %s4829_s15 }
 0x103   : > { %3938 = vmatmul.mubr.msk.f32.vlgmr.msra.gmra.mxu1 %vm624_vm1, %v700_v29 }
 0x104   : > { %851 = vmatprep.mubr.f32.mxu1 %v4078_v0 }
 0x106   : > { %617 = vrot.lane.b32.xlu1 %v4215_v28, %s4831_s14  ;;  %860 = vrot.lane.b32.xlu0 %v4213_v26, %s4827_s16 }
 0x10a   : > { %776 = vrot.lane.b32.xlu1 %v4215_v28, %s4829_s15  ;;  %946 = vrot.lane.b32.xlu0 %v4213_v26, %s4837_s17  ;;  %s4835_s15 = smov 64  }
 0x10e   : > { %862 = vrot.lane.b32.xlu1 %v4215_v28, %s4827_s16  ;;  %1118 = vrot.lane.b32.xlu0 %v4213_v26, %s4090_s18  ;;  %s4850_s16 = smov 15  }
 0x112   : > { %948 = vrot.lane.b32.xlu1 %v4215_v28, %s4837_s17  ;;  %1290 = vrot.lane.b32.xlu0 %v4213_v26, %s4091_s19 }
 0x116   : > { %1120 = vrot.lane.b32.xlu1 %v4215_v28, %s4090_s18  ;;  %1034 = vrot.lane.b32.xlu0 %v4215_v28, %s4839_s30 }
 0x11a   : > { %1292 = vrot.lane.b32.xlu1 %v4215_v28, %s4091_s19  ;;  %1206 = vrot.lane.b32.xlu0 %v4215_v28, %s4081_s23 }
 0x11e   : > { %1127 = vrot.lane.b32.xlu0 %v4197_v9, %s4092_s20  ;;  %1213 = vrot.lane.b32.xlu1 %v4197_v9, %s4093_s21 }
 0x122   : > { %1299 = vrot.lane.b32.xlu0 %v4197_v9, %s4835_s15  ;;  %1379 = vperm.xlu1 %4005, %v1376_v30   ;;  %v4403_v30 = vsel %vm475_vm2, 1.0, %v4078_v0 }
 0x170   : > { %v4274_v39 = vpop.permute.xlu1 %1032  ;;  %v616_v40 = vpop.permute.xlu0 %615 }
 0x174   : > { %v4282_v43 = vpop.permute.xlu1 %1204  ;;  %v775_v44 = vpop.permute.xlu0 %774 }
 0x178   : > { %v618_v48 = vpop.permute.xlu1 %617  ;;  %v861_v49 = vpop.permute.xlu0 %860 }
 0x179   : > { %v620_v50 = vsel %vm619_vm6, %v616_v40, %v618_v48  ;;  %v621_v51 = vsel %vm619_vm6, %v618_v48, %v616_v40 }
 0x17a   : > { %v622_v53 = vmul.f32 %v621_v51, %v4294_v46  ;;  %v623_v54 = vmul.f32 %v620_v50, %v4299_v47 }
 0x17c   : > { %v777_v56 = vpop.permute.xlu1 %776  ;;  %658 = vmatprep.subr.mxu0 %v623_v54  ;;  %v947_v57 = vpop.permute.xlu0 %946 }
 0x17d   : > { %v780_v59 = vsel %vm778_vm8, %v777_v56, %v775_v44  ;;  %659 = vmatpush1.msra.mxu0 %v622_v53  ;;  %v779_v60 = vsel %vm778_vm8, %v775_v44, %v777_v56 }
 0x17e   : > { %v781_v61 = vmul.f32 %v780_v59, %v4315_v55  ;;  %3937 = vmatmul.mubr.msk.f32.vlgmr.msra.gmra.mxu0 %vm624_vm1, %v4197_v9  ;;  %817 = vmatprep.subr.mxu1 %v779_v60 }
 0x17f   : > { %937 = vmatprep.mubr.f32.mxu0 %v4078_v0 }
 0x180   : > { %v863_v1 = vpop.permute.xlu1 %862  ;;  %v1119_v2 = vpop.permute.xlu0 %1118  ;;  %818 = vmatpush1.msra.mxu1 %v781_v61 }
 0x181   : > { %v865_v3 = vsel %vm864_vm11, %v861_v49, %v863_v1  ;;  %v866_v4 = vsel %vm864_vm11, %v863_v1, %v861_v49  ;;  %3939 = vmatmul.mubr.msk.f32.vlgmr.msra.gmra.mxu1 %vm624_vm1, %v784_v32 }
 0x182   : > { %v867_v5 = vmul.f32 %v866_v4, %v4334_v62  ;;  %v868_v6 = vmul.f32 %v865_v3, %v4339_v63  ;;  %1023 = vmatprep.mubr.f32.mxu1 %v4078_v0 }
 0x184   : > { %v949_v8 = vpop.permute.xlu1 %948  ;;  %903 = vmatprep.subr.mxu0 %v868_v6  ;;  %v1291_v9 = vpop.permute.xlu0 %1290 }
 0x185   : > { %v951_v12 = vsel %vm950_vm13, %v947_v57, %v949_v8  ;;  %v952_v13 = vsel %vm950_vm13, %v949_v8, %v947_v57  ;;  %904 = vmatpush1.msra.mxu0 %v867_v5 }
 0x186   : > { %v953_v14 = vmul.f32 %v952_v13, %v4355_v7  ;;  %v954_v15 = vmul.f32 %v951_v12, %v4299_v47  ;;  %3940 = vmatmul.mubr.msk.f32.vlgmr.msra.gmra.mxu0 %vm624_vm1, %v4262_v31  ;;  %v4408_v31 = vsel %vm449_vm12, 1.0, %v4078_v0 }
 0x187   : > { %1109 = vmatprep.mubr.f32.mxu0 %v4078_v0 }
 0x188   : > { %v1121_v18 = vpop.permute.xlu1 %1120  ;;  %v1035_v19 = vpop.permute.xlu0 %1034  ;;  %989 = vmatprep.subr.mxu1 %v954_v15 }
 0x189   : > { %v1123_v20 = vsel %vm1122_vm15, %v1119_v2, %v1121_v18  ;;  %v1124_v21 = vsel %vm1122_vm15, %v1121_v18, %v1119_v2  ;;  %v1037_v22 = vsel %vm1036_vm0, %v4274_v39, %v1035_v19  ;;  %v1038_v23 = vsel %vm1036_vm0, %v1035_v19, %v4274_v39  ;;  %990 = vmatpush1.msra.mxu1 %v953_v14 }
 0x18a   : > { %v1125_v24 = vmul.f32 %v1123_v20, %v4355_v7  ;;  %v1126_v25 = vmul.f32 %v1124_v21, %v4377_v17  ;;  %v1039_v27 = vmul.f32 %v1037_v22, %v4374_v16  ;;  %v1040_v29 = vmul.f32 %v1038_v23, %v4339_v63  ;;  %3941 = vmatmul.mubr.msk.f32.vlgmr.msra.gmra.mxu1 %vm624_vm1, %v4268_v36 }
 0x18b   : > { %1195 = vmatprep.mubr.f32.mxu1 %v4078_v0 }
 0x18c   : > { %v1293_v32 = vpop.permute.xlu1 %1292  ;;  %1075 = vmatprep.subr.mxu0 %v1040_v29  ;;  %v1207_v33 = vpop.permute.xlu0 %1206  ;;  %1161 = vmatprep.subr.mxu1 %v1126_v25 }
 0x18d   : > { %v1295_v38 = vsel %vm1294_vm3, %v1291_v9, %v1293_v32  ;;  %v1296_v36 = vsel %vm1294_vm3, %v1293_v32, %v1291_v9  ;;  %v1210_v39 = vsel %vm1208_vm4, %v1207_v33, %v4282_v43  ;;  %1076 = vmatpush1.msra.mxu0 %v1039_v27  ;;  %1162 = vmatpush1.msra.mxu1 %v1125_v24 }
 0x18e   : > { %v1297_v37 = vmul.f32 %v1295_v38, %v4374_v16  ;;  %v1298_v40 = vmul.f32 %v1296_v36, %v4403_v30  ;;  %v1212_v41 = vmul.f32 %v1210_v39, %v4408_v31  ;;  %3942 = vmatmul.mubr.msk.f32.vlgmr.msra.gmra.mxu0 %vm624_vm1, %v4266_v35  ;;  %v1209_v42 = vsel %vm1208_vm4, %v4282_v43, %v1207_v33  ;;  %v4436_v43 = vld [vmem:[%s4817_s5] sm:$0xff] }
 0x18f   : > { %1281 = vmatprep.mubr.f32.mxu0 %v4078_v0  ;;  %1481 = vrot.lane.b32.xlu0 %v4436_v43, %s4080_s22 }
 0x190   : > { %1247 = vmatprep.subr.mxu0 %v1212_v41  ;;  %v1128_v44 = vpop.permute.xlu0 %1127  ;;  %1333 = vmatprep.subr.mxu1 %v1298_v40  ;;  %v1214_v45 = vpop.permute.xlu1 %1213 }
 0x191   : > { %3943 = vmatmul.mubr.msk.f32.vlgmr.msra.gmra.mxu1 %vm624_vm1, %v1128_v44  ;;  %1248 = vmatpush1.msra.mxu0 %v1209_v42 }
 0x192   : > { %1334 = vmatpush1.msra.mxu1 %v1297_v37  ;;  %3944 = vmatmul.mubr.msk.f32.vlgmr.msra.gmra.mxu0 %vm624_vm1, %v1214_v45 }
 0x193   : > { %1367 = vmatprep.mubr.f32.mxu1 %v4078_v0  ;;  %1474 = vmatprep.mubr.f32.mxu0 %v4078_v0 }
 0x194   : > { %v1300_v35 = vpop.permute.xlu0 %1299  ;;  %1564 = vrot.lane.b32.xlu1 %v4436_v43, %s4082_s24  ;;  %1649 = vrot.lane.b32.xlu0 %v4436_v43, %s4081_s23 }
 0x195   : > { %3945 = vmatmul.mubr.msk.f32.vlgmr.msra.gmra.mxu1 %vm624_vm1, %v1300_v35 }
 0x196   : > { %1549 = vmatprep.mubr.f32.mxu1 %v4078_v0 }
 0x198   : > { %1734 = vrot.lane.b32.xlu1 %v4436_v43, %s4084_s28  ;;  %1819 = vrot.lane.b32.xlu0 %v4436_v43, %s4833_s27  ;;  %s4852_s27 = smov 17  }
 0x19d   : > { %v1380_v23 = vpop.permute.xlu1 %1379 }
 0x1c3   : > { %v769_v48 = vpop.f32.mrf.mxu1 }
 0x1c5   : > { %v771_v50 = vpop.f32.mrf.mxu1 }
 0x23e   : > { %v694_v49 = vpop.f32.mrf.mxu0 }
 0x23f   : > { %v770_v53 = vadd.f32 %v769_v48, %v694_v49 }
 0x240   : > { %v696_v51 = vpop.f32.mrf.mxu0 }
 0x241   : > { %v853_v52 = vpop.f32.mrf.mxu1  ;;  %v772_v56 = vadd.f32 %v771_v50, %v696_v51  ;;  %v1482_v50 = vpop.permute.xlu0 %1481  ;;  %v2151_v51 = vld [vmem:[%s4818_s6] sm:$0xff] }
 0x242   : > { %v858_v58 = vadd.f32 %v853_v52, %v770_v53  ;;  %v1565_v52 = vpop.permute.xlu1 %1564 }
 0x243   : > { %v855_v57 = vpop.f32.mrf.mxu1 }
 0x244   : > { %v859_v61 = vadd.f32 %v855_v57, %v772_v56 }
 0x245   : > { %v1650_v53 = vpop.permute.xlu0 %1649 }
 0x246   : > { %v939_v54 = vpop.f32.mrf.mxu0 }
 0x247   : > { %v944_v1 = vadd.f32 %v939_v54, %v858_v58  ;;  %v1735_v54 = vpop.permute.xlu1 %1734 }
 0x248   : > { %v941_v59 = vpop.f32.mrf.mxu0 }
 0x249   : > { %v945_v3 = vadd.f32 %v941_v59, %v859_v61  ;;  %v4475_v56 = vpop.permute.xlu0 %1819 }
 0x24a   : > { %v1025_v60 = vpop.f32.mrf.mxu1 }
 0x24b   : > { %v1030_v4 = vadd.f32 %v1025_v60, %v944_v1 }
 0x24c   : > { %v1027_v2 = vpop.f32.mrf.mxu1 }
 0x24d   : > { %v1031_v6 = vadd.f32 %v1027_v2, %v945_v3 }
 0x24e   : > { %v1111_v5 = vpop.f32.mrf.mxu0 }
 0x24f   : > { %v1116_v8 = vadd.f32 %v1111_v5, %v1030_v4 }
 0x250   : > { %v1113_v9 = vpop.f32.mrf.mxu0 }
 0x251   : > { %v1117_v12 = vadd.f32 %v1113_v9, %v1031_v6  ;;  %v1197_v13 = vpop.f32.mrf.mxu1 }
 0x252   : > { %v1202_v14 = vadd.f32 %v1197_v13, %v1116_v8  ;;  %v1283_v15 = vpop.f32.mrf.mxu0 }
 0x253   : > { %v1199_v18 = vpop.f32.mrf.mxu1 }
 0x254   : > { %v1288_v19 = vadd.f32 %v1283_v15, %v1202_v14  ;;  %v1203_v20 = vadd.f32 %v1199_v18, %v1117_v12  ;;  %v1285_v21 = vpop.f32.mrf.mxu0 }
 0x255   : > { %v1369_v22 = vpop.f32.mrf.mxu1 }
 0x256   : > { %v1289_v24 = vadd.f32 %v1285_v21, %v1203_v20  ;;  %v1374_v25 = vadd.f32 %v1369_v22, %v1288_v19 }
 0x257   : > { %v1371_v27 = vpop.f32.mrf.mxu1 }
 0x258   : > { %v1382_v29 = vadd.f32 %v1380_v23, %v1374_v25  ;;  %v1375_v32 = vadd.f32 %v1371_v27, %v1289_v24 }
 0x25a   : > { %v1384_v33 = vsub.f32 0.0, %v1382_v29  ;;  %v1383_v38 = vadd.f32 %v1380_v23, %v1375_v32 }
 0x25c   : > { %v1386_v36 = vmul.f32 1.442695, %v1384_v33  ;;  %v1385_v39 = vsub.f32 0.0, %v1383_v38 }
 0x25e   : > { %4014 = vpow2.f32 %v1386_v36  ;;  %v1388_v37 = vmul.f32 1.442695, %v1385_v39 }
 0x260   : > { %4016 = vpow2.f32 %v1388_v37 }
 0x26b   : > { %v4015_v40 = vpop.eup %4014 }
 0x26c   : > { %v1390_v41 = vadd.f32 1.0, %v4015_v40 }
 0x26d   : > { %v4017_v42 = vpop.eup %4016 }
 0x26e   : > { %4018 = vrcp.f32 %v1390_v41  ;;  %v1391_v44 = vadd.f32 1.0, %v4017_v42 }
 0x270   : > { %4020 = vrcp.f32 %v1391_v44 }
 0x27b   : > { %v4019_v45 = vpop.eup %4018 }
 0x27c   : > { %v1396_v35 = vmul.f32 %v4019_v45, %v1382_v29 }
 0x27d   : > { %v4021_v48 = vpop.eup %4020 }
 0x27e   : > { %v1397_v49 = vmul.f32 %v4021_v48, %v1383_v38  ;;  %1726 = vrot.lane.b32.xlu1 %v1396_v35, %s4837_s17  ;;  %1399 = vrot.lane.b32.xlu0 %v1396_v35, %s4831_s14 }
 0x280   : > { %1515 = vmatprep.subr.mxu1 %v1397_v49 }
 0x281   : > { %1516 = vmatpush1.msra.mxu1 %v1396_v35 }
 0x282   : > { %1896 = vrot.lane.b32.xlu1 %v1396_v35, %s4090_s18  ;;  %1556 = vrot.lane.b32.xlu0 %v1396_v35, %s4849_s29 }
 0x283   : > { %3947 = vmatmul.mubr.msk.f32.vlgmr.msra.gmra.mxu1 %vm624_vm1, %v1482_v50 }
 0x284   : > { %1717 = vmatprep.mubr.f32.mxu1 %v4078_v0 }
 0x286   : > { %2066 = vrot.lane.b32.xlu1 %v1396_v35, %s4091_s19  ;;  %1641 = vrot.lane.b32.xlu0 %v1396_v35, %s4850_s16 }
 0x28a   : > { %1401 = vrot.lane.b32.xlu1 %v1397_v49, %s4831_s14  ;;  %1811 = vrot.lane.b32.xlu0 %v1396_v35, %s4839_s30  ;;  %s4856_s14 = sshll.u32 %s4858_s26, 5 }
 0x28e   : > { %1558 = vrot.lane.b32.xlu1 %v1397_v49, %s4849_s29  ;;  %1981 = vrot.lane.b32.xlu0 %v1396_v35, %s4081_s23 }
 0x292   : > { %1643 = vrot.lane.b32.xlu1 %v1397_v49, %s4850_s16  ;;  %1728 = vrot.lane.b32.xlu0 %v1397_v49, %s4837_s17 }
 0x296   : > { %1813 = vrot.lane.b32.xlu1 %v1397_v49, %s4839_s30  ;;  %1898 = vrot.lane.b32.xlu0 %v1397_v49, %s4090_s18 }
 0x29a   : > { %1983 = vrot.lane.b32.xlu1 %v1397_v49, %s4081_s23  ;;  %2068 = vrot.lane.b32.xlu0 %v1397_v49, %s4091_s19 }
 0x29e   : > { %1904 = vrot.lane.b32.xlu1 %v4436_v43, %s4092_s20  ;;  %1989 = vrot.lane.b32.xlu0 %v4436_v43, %s4093_s21 }
 0x2a2   : > { %2074 = vrot.lane.b32.xlu1 %v4436_v43, %s4835_s15  ;;  %2154 = vperm.xlu0 %4004, %v2151_v51   ;;  %s4851_s15 = smov 88  }
 0x2f0   : > { %v1727_v57 = vpop.permute.xlu1 %1726  ;;  %v1400_v58 = vpop.permute.xlu0 %1399 }
 0x2f4   : > { %v1897_v59 = vpop.permute.xlu1 %1896  ;;  %v1557_v60 = vpop.permute.xlu0 %1556 }
 0x2f8   : > { %v2067_v61 = vpop.permute.xlu1 %2066  ;;  %v1642_v1 = vpop.permute.xlu0 %1641 }
 0x2fc   : > { %v1402_v2 = vpop.permute.xlu1 %1401  ;;  %v1812_v3 = vpop.permute.xlu0 %1811 }
 0x2fd   : > { %v1403_v4 = vsel %vm619_vm6, %v1400_v58, %v1402_v2  ;;  %v1404_v5 = vsel %vm619_vm6, %v1402_v2, %v1400_v58  ;;  %v4544_v58 = vld [vmem:[%s4819_s7] sm:$0xff] }
 0x2fe   : > { %v1405_v6 = vmul.f32 %v1404_v5, %v4294_v46  ;;  %v1406_v8 = vmul.f32 %v1403_v4, %v4299_v47  ;;  %2262 = vrot.lane.b32.xlu1 %v4544_v58, %s4080_s22  ;;  %2345 = vrot.lane.b32.xlu0 %v4544_v58, %s4082_s24 }
 0x300   : > { %v1559_v9 = vpop.permute.xlu1 %1558  ;;  %1440 = vmatprep.subr.mxu0 %v1406_v8  ;;  %v1982_v12 = vpop.permute.xlu0 %1981 }
 0x301   : > { %v1561_v13 = vsel %vm778_vm8, %v1559_v9, %v1557_v60  ;;  %1441 = vmatpush1.msra.mxu0 %v1405_v6  ;;  %v1560_v14 = vsel %vm778_vm8, %v1557_v60, %v1559_v9 }
 0x302   : > { %v1562_v15 = vmul.f32 %v1561_v13, %v4315_v55  ;;  %3946 = vmatmul.mubr.msk.f32.vlgmr.msra.gmra.mxu0 %vm624_vm1, %v4436_v43  ;;  %1598 = vmatprep.subr.mxu0 %v1560_v14 }
 0x303   : > { %1632 = vmatprep.mubr.f32.mxu0 %v4078_v0  ;;  %2430 = vrot.lane.b32.xlu1 %v4544_v58, %s4081_s23 }
 0x304   : > { %v1644_v18 = vpop.permute.xlu1 %1643  ;;  %1599 = vmatpush1.msra.mxu0 %v1562_v15  ;;  %v1729_v19 = vpop.permute.xlu0 %1728  ;;  %2515 = vrot.lane.b32.xlu0 %v4544_v58, %s4084_s28 }
 0x305   : > { %v1645_v20 = vsel %vm864_vm11, %v1642_v1, %v1644_v18  ;;  %v1646_v21 = vsel %vm864_vm11, %v1644_v18, %v1642_v1  ;;  %v1730_v22 = vsel %vm950_vm13, %v1727_v57, %v1729_v19  ;;  %v1731_v23 = vsel %vm950_vm13, %v1729_v19, %v1727_v57 }
 0x306   : > { %v1647_v43 = vmul.f32 %v1646_v21, %v4334_v62  ;;  %v1648_v24 = vmul.f32 %v1645_v20, %v4339_v63  ;;  %v1732_v25 = vmul.f32 %v1731_v23, %v4355_v7  ;;  %v1733_v27 = vmul.f32 %v1730_v22, %v4299_v47  ;;  %3948 = vmatmul.mubr.msk.f32.vlgmr.msra.gmra.mxu0 %vm624_vm1, %v1565_v52 }
 0x307   : > { %1802 = vmatprep.mubr.f32.mxu0 %v4078_v0  ;;  %2600 = vrot.lane.b32.xlu1 %v4544_v58, %s4851_s15 }
 0x308   : > { %v1814_v29 = vpop.permute.xlu1 %1813  ;;  %1768 = vmatprep.subr.mxu0 %v1733_v27  ;;  %v1899_v32 = vpop.permute.xlu0 %1898  ;;  %1683 = vmatprep.subr.mxu1 %v1648_v24 }
 0x309   : > { %v1815_v33 = vsel %vm1036_vm0, %v1812_v3, %v1814_v29  ;;  %v1816_v38 = vsel %vm1036_vm0, %v1814_v29, %v1812_v3  ;;  %v1900_v36 = vsel %vm1122_vm15, %v1897_v59, %v1899_v32  ;;  %v1901_v39 = vsel %vm1122_vm15, %v1899_v32, %v1897_v59  ;;  %1684 = vmatpush1.msra.mxu1 %v1647_v43 }
 0x30a   : > { %v1817_v37 = vmul.f32 %v1815_v33, %v4374_v16  ;;  %v1818_v40 = vmul.f32 %v1816_v38, %v4339_v63  ;;  %v1902_v41 = vmul.f32 %v1900_v36, %v4355_v7  ;;  %v1903_v42 = vmul.f32 %v1901_v39, %v4377_v17  ;;  %1769 = vmatpush1.msra.mxu0 %v1732_v25 }
 0x30b   : > { %3949 = vmatmul.mubr.msk.f32.vlgmr.msra.gmra.mxu1 %vm624_vm1, %v1650_v53  ;;  %3950 = vmatmul.mubr.msk.f32.vlgmr.msra.gmra.mxu0 %vm624_vm1, %v1735_v54 }
 0x30c   : > { %v1984_v44 = vpop.permute.xlu1 %1983  ;;  %1938 = vmatprep.subr.mxu0 %v1903_v42  ;;  %v2069_v45 = vpop.permute.xlu0 %2068  ;;  %1853 = vmatprep.subr.mxu1 %v1818_v40 }
 0x30d   : > { %v1986_v35 = vsel %vm1208_vm4, %v1984_v44, %v1982_v12  ;;  %v2070_v48 = vsel %vm1294_vm3, %v2067_v61, %v2069_v45  ;;  %v2071_v49 = vsel %vm1294_vm3, %v2069_v45, %v2067_v61  ;;  %1854 = vmatpush1.msra.mxu1 %v1817_v37  ;;  %1887 = vmatprep.mubr.f32.mxu1 %v4078_v0 }
 0x30e   : > { %v1988_v50 = vmul.f32 %v1986_v35, %v4408_v31  ;;  %v2072_v51 = vmul.f32 %v2070_v48, %v4374_v16  ;;  %v2073_v52 = vmul.f32 %v2071_v49, %v4403_v30  ;;  %1939 = vmatpush1.msra.mxu0 %v1902_v41  ;;  %1972 = vmatprep.mubr.f32.mxu0 %v4078_v0 }
 0x30f   : > { %3951 = vmatmul.mubr.msk.f32.vlgmr.msra.gmra.mxu1 %vm624_vm1, %v4475_v56  ;;  %v1985_v53 = vsel %vm1208_vm4, %v1982_v12, %v1984_v44 }
 0x310   : > { %v1905_v54 = vpop.permute.xlu1 %1904  ;;  %2023 = vmatprep.subr.mxu1 %v1988_v50  ;;  %2108 = vmatprep.subr.mxu0 %v2073_v52  ;;  %v1990_v57 = vpop.permute.xlu0 %1989 }
 0x311   : > { %3952 = vmatmul.mubr.msk.f32.vlgmr.msra.gmra.mxu0 %vm624_vm1, %v1905_v54  ;;  %2024 = vmatpush1.msra.mxu1 %v1985_v53 }
 0x312   : > { %2109 = vmatpush1.msra.mxu0 %v2072_v51  ;;  %2057 = vmatprep.mubr.f32.mxu1 %v4078_v0 }
 0x313   : > { %3953 = vmatmul.mubr.msk.f32.vlgmr.msra.gmra.mxu1 %vm624_vm1, %v1990_v57  ;;  %2142 = vmatprep.mubr.f32.mxu0 %v4078_v0 }
 0x314   : > { %v2075_v56 = vpop.permute.xlu1 %2074  ;;  %2255 = vmatprep.mubr.f32.mxu1 %v4078_v0 }
 0x315   : > { %3954 = vmatmul.mubr.msk.f32.vlgmr.msra.gmra.mxu0 %vm624_vm1, %v2075_v56 }
 0x316   : > { %2330 = vmatprep.mubr.f32.mxu0 %v4078_v0 }
 0x31d   : > { %v2155_v40 = vpop.permute.xlu0 %2154 }
 0x343   : > { %v1551_v61 = vpop.f32.mrf.mxu1 }
 0x345   : > { %v1553_v4 = vpop.f32.mrf.mxu1 }
 0x3c2   : > { %v1476_v59 = vpop.f32.mrf.mxu0 }
 0x3c3   : > { %v1552_v2 = vadd.f32 %v1551_v61, %v1476_v59 }
 0x3c4   : > { %v1478_v60 = vpop.f32.mrf.mxu0 }
 0x3c5   : > { %v1554_v5 = vadd.f32 %v1553_v4, %v1478_v60 }
 0x3c6   : > { %v1634_v1 = vpop.f32.mrf.mxu0 }
 0x3c7   : > { %v1639_v6 = vadd.f32 %v1634_v1, %v1552_v2  ;;  %v2263_v2 = vpop.permute.xlu1 %2262 }
 0x3c8   : > { %v1636_v3 = vpop.f32.mrf.mxu0 }
 0x3c9   : > { %v1640_v12 = vadd.f32 %v1636_v3, %v1554_v5  ;;  %v2932_v3 = vld [vmem:[%s4820_s8] sm:$0xff]  ;;  %v2346_v5 = vpop.permute.xlu0 %2345 }
 0x3cb   : > { %v1719_v8 = vpop.f32.mrf.mxu1  ;;  %v1804_v9 = vpop.f32.mrf.mxu0 }
 0x3cc   : > { %v1724_v13 = vadd.f32 %v1719_v8, %v1639_v6  ;;  %v2431_v4 = vpop.permute.xlu1 %2430 }
 0x3cd   : > { %v1721_v14 = vpop.f32.mrf.mxu1  ;;  %v1806_v19 = vpop.f32.mrf.mxu0 }
 0x3ce   : > { %v1809_v15 = vadd.f32 %v1804_v9, %v1724_v13  ;;  %v1725_v18 = vadd.f32 %v1721_v14, %v1640_v12  ;;  %v2516_v8 = vpop.permute.xlu0 %2515 }
 0x3cf   : > { %v1889_v20 = vpop.f32.mrf.mxu1 }
 0x3d0   : > { %v1810_v21 = vadd.f32 %v1806_v19, %v1725_v18  ;;  %v1894_v22 = vadd.f32 %v1889_v20, %v1809_v15  ;;  %v4607_v6 = vpop.permute.xlu1 %2600 }
 0x3d1   : > { %v1891_v23 = vpop.f32.mrf.mxu1  ;;  %v1974_v43 = vpop.f32.mrf.mxu0 }
 0x3d2   : > { %v1895_v24 = vadd.f32 %v1891_v23, %v1810_v21  ;;  %v1979_v25 = vadd.f32 %v1974_v43, %v1894_v22 }
 0x3d3   : > { %v2059_v27 = vpop.f32.mrf.mxu1  ;;  %v1976_v29 = vpop.f32.mrf.mxu0 }
 0x3d4   : > { %v2064_v32 = vadd.f32 %v2059_v27, %v1979_v25  ;;  %v1980_v33 = vadd.f32 %v1976_v29, %v1895_v24 }
 0x3d5   : > { %v2061_v38 = vpop.f32.mrf.mxu1  ;;  %v2144_v36 = vpop.f32.mrf.mxu0 }
 0x3d6   : > { %v2065_v39 = vadd.f32 %v2061_v38, %v1980_v33  ;;  %v2149_v37 = vadd.f32 %v2144_v36, %v2064_v32 }
 0x3d7   : > { %v2146_v41 = vpop.f32.mrf.mxu0 }
 0x3d8   : > { %v2157_v42 = vadd.f32 %v2155_v40, %v2149_v37  ;;  %v2150_v44 = vadd.f32 %v2146_v41, %v2065_v39 }
 0x3da   : > { %v2159_v45 = vsub.f32 0.0, %v2157_v42  ;;  %v2158_v35 = vadd.f32 %v2155_v40, %v2150_v44 }
 0x3dc   : > { %v2161_v48 = vmul.f32 1.442695, %v2159_v45  ;;  %v2160_v49 = vsub.f32 0.0, %v2158_v35 }
 0x3de   : > { %4022 = vpow2.f32 %v2161_v48  ;;  %v2163_v50 = vmul.f32 1.442695, %v2160_v49 }
 0x3e0   : > { %4024 = vpow2.f32 %v2163_v50 }
 0x3eb   : > { %v4023_v51 = vpop.eup %4022 }
 0x3ec   : > { %v2165_v52 = vadd.f32 1.0, %v4023_v51 }
 0x3ed   : > { %v4025_v53 = vpop.eup %4024 }
 0x3ee   : > { %4026 = vrcp.f32 %v2165_v52  ;;  %v2166_v54 = vadd.f32 1.0, %v4025_v53 }
 0x3f0   : > { %4028 = vrcp.f32 %v2166_v54 }
 0x3fb   : > { %v4027_v57 = vpop.eup %4026 }
 0x3fc   : > { %v2171_v56 = vmul.f32 %v4027_v57, %v2157_v42 }
 0x3fd   : > { %v4029_v59 = vpop.eup %4028 }
 0x3fe   : > { %v4557_v60 = vadd.f32 %v2171_v56, %v4213_v26  ;;  %v2172_v61 = vmul.f32 %v4029_v59, %v2158_v35 }
 0x400   : > { %v4560_v1 = vadd.f32 %v2172_v61, %v4215_v28  ;;  %2507 = vrot.lane.b32.xlu0 %v4557_v60, %s4837_s17  ;;  %2180 = vrot.lane.b32.xlu1 %v4557_v60, %s4852_s27 }
 0x402   : > { %2296 = vmatprep.subr.mxu0 %v4560_v1 }
 0x403   : > { %2297 = vmatpush1.msra.mxu0 %v4557_v60 }
 0x404   : > { %2677 = vrot.lane.b32.xlu0 %v4557_v60, %s4090_s18  ;;  %2337 = vrot.lane.b32.xlu1 %v4557_v60, %s4849_s29 }
 0x405   : > { %3956 = vmatmul.mubr.msk.f32.vlgmr.msra.gmra.mxu0 %vm624_vm1, %v2263_v2 }
 0x406   : > { %2498 = vmatprep.mubr.f32.mxu0 %v4078_v0 }
 0x408   : > { %2847 = vrot.lane.b32.xlu0 %v4557_v60, %s4091_s19  ;;  %2422 = vrot.lane.b32.xlu1 %v4557_v60, %s4850_s16 }
 0x40c   : > { %2182 = vrot.lane.b32.xlu0 %v4560_v1, %s4852_s27  ;;  %2592 = vrot.lane.b32.xlu1 %v4557_v60, %s4839_s30 }
 0x410   : > { %2339 = vrot.lane.b32.xlu0 %v4560_v1, %s4849_s29  ;;  %2762 = vrot.lane.b32.xlu1 %v4557_v60, %s4081_s23 }
 0x414   : > { %2424 = vrot.lane.b32.xlu0 %v4560_v1, %s4850_s16  ;;  %2509 = vrot.lane.b32.xlu1 %v4560_v1, %s4837_s17 }
 0x418   : > { %2594 = vrot.lane.b32.xlu0 %v4560_v1, %s4839_s30  ;;  %2679 = vrot.lane.b32.xlu1 %v4560_v1, %s4090_s18  ;;  %s4853_s30 = smov 64  }
 0x41c   : > { %2764 = vrot.lane.b32.xlu0 %v4560_v1, %s4081_s23  ;;  %2849 = vrot.lane.b32.xlu1 %v4560_v1, %s4091_s19 }
 0x420   : > { %2685 = vrot.lane.b32.xlu0 %v4544_v58, %s4092_s20  ;;  %2770 = vrot.lane.b32.xlu1 %v4544_v58, %s4093_s21 }
 0x424   : > { %2855 = vrot.lane.b32.xlu0 %v4544_v58, %s4853_s30  ;;  %2935 = vperm.xlu1 %4005, %v2932_v3  }
 0x472   : > { %v2508_v9 = vpop.permute.xlu0 %2507  ;;  %v2181_v12 = vpop.permute.xlu1 %2180 }
 0x476   : > { %v2678_v13 = vpop.permute.xlu0 %2677  ;;  %v2338_v14 = vpop.permute.xlu1 %2337 }
 0x47a   : > { %v2848_v15 = vpop.permute.xlu0 %2847  ;;  %v2423_v18 = vpop.permute.xlu1 %2422 }
 0x47e   : > { %v2183_v19 = vpop.permute.xlu0 %2182  ;;  %v2593_v20 = vpop.permute.xlu1 %2592 }
 0x47f   : > { %v2184_v21 = vsel %vm619_vm6, %v2181_v12, %v2183_v19  ;;  %v2185_v22 = vsel %vm619_vm6, %v2183_v19, %v2181_v12 }
 0x480   : > { %v2186_v23 = vmul.f32 %v2185_v22, %v4294_v46  ;;  %v2187_v43 = vmul.f32 %v2184_v21, %v4299_v47 }
 0x482   : > { %v2340_v24 = vpop.permute.xlu0 %2339  ;;  %2221 = vmatprep.subr.mxu1 %v2187_v43  ;;  %v2763_v25 = vpop.permute.xlu1 %2762 }
 0x483   : > { %v2342_v27 = vsel %vm778_vm8, %v2340_v24, %v2338_v14  ;;  %2222 = vmatpush1.msra.mxu1 %v2186_v23  ;;  %v2341_v29 = vsel %vm778_vm8, %v2338_v14, %v2340_v24  ;;  %v4676_v14 = vld [vmem:[%s4821_s9] sm:$0xff] }
 0x484   : > { %v2343_v32 = vmul.f32 %v2342_v27, %v4315_v55  ;;  %3955 = vmatmul.mubr.msk.f32.vlgmr.msra.gmra.mxu1 %vm624_vm1, %v4544_v58  ;;  %2379 = vmatprep.subr.mxu1 %v2341_v29 }
 0x485   : > { %2413 = vmatprep.mubr.f32.mxu1 %v4078_v0  ;;  %3037 = vrot.lane.b32.xlu0 %v4676_v14, %s4080_s22  ;;  %s4854_s22 = smov 1  }
 0x486   : > { %v2425_v33 = vpop.permute.xlu0 %2424  ;;  %2380 = vmatpush1.msra.mxu1 %v2343_v32  ;;  %v2510_v38 = vpop.permute.xlu1 %2509  ;;  %3120 = vrot.lane.b32.xlu1 %v4676_v14, %s4082_s24  ;;  %s4855_s24 = smov 127  }
 0x487   : > { %v2426_v36 = vsel %vm864_vm11, %v2423_v18, %v2425_v33  ;;  %v2427_v39 = vsel %vm864_vm11, %v2425_v33, %v2423_v18  ;;  %v2511_v37 = vsel %vm950_vm13, %v2508_v9, %v2510_v38  ;;  %v2512_v40 = vsel %vm950_vm13, %v2510_v38, %v2508_v9 }
 0x488   : > { %v2428_v58 = vmul.f32 %v2427_v39, %v4334_v62  ;;  %v2429_v41 = vmul.f32 %v2426_v36, %v4339_v63  ;;  %v2513_v42 = vmul.f32 %v2512_v40, %v4355_v7  ;;  %v2514_v44 = vmul.f32 %v2511_v37, %v4299_v47  ;;  %3957 = vmatmul.mubr.msk.f32.vlgmr.msra.gmra.mxu1 %vm624_vm1, %v2346_v5 }
 0x489   : > { %2583 = vmatprep.mubr.f32.mxu1 %v4078_v0  ;;  %3205 = vrot.lane.b32.xlu0 %v4676_v14, %s4081_s23 }
 0x48a   : > { %v2595_v45 = vpop.permute.xlu0 %2594  ;;  %2549 = vmatprep.subr.mxu1 %v2514_v44  ;;  %v2680_v35 = vpop.permute.xlu1 %2679  ;;  %2464 = vmatprep.subr.mxu0 %v2429_v41 }
 0x48b   : > { %v2596_v48 = vsel %vm1036_vm0, %v2593_v20, %v2595_v45  ;;  %v2597_v49 = vsel %vm1036_vm0, %v2595_v45, %v2593_v20  ;;  %v2681_v50 = vsel %vm1122_vm15, %v2678_v13, %v2680_v35  ;;  %v2682_v51 = vsel %vm1122_vm15, %v2680_v35, %v2678_v13  ;;  %2465 = vmatpush1.msra.mxu0 %v2428_v58 }
 0x48c   : > { %v2598_v52 = vmul.f32 %v2596_v48, %v4374_v16  ;;  %v2599_v53 = vmul.f32 %v2597_v49, %v4339_v63  ;;  %v2683_v54 = vmul.f32 %v2681_v50, %v4355_v7  ;;  %v2684_v57 = vmul.f32 %v2682_v51, %v4377_v17  ;;  %2550 = vmatpush1.msra.mxu1 %v2513_v42 }
 0x48d   : > { %3958 = vmatmul.mubr.msk.f32.vlgmr.msra.gmra.mxu0 %vm624_vm1, %v2431_v4  ;;  %3959 = vmatmul.mubr.msk.f32.vlgmr.msra.gmra.mxu1 %vm624_vm1, %v2516_v8 }
 0x48e   : > { %v2765_v56 = vpop.permute.xlu0 %2764  ;;  %2719 = vmatprep.subr.mxu1 %v2684_v57  ;;  %v2850_v59 = vpop.permute.xlu1 %2849  ;;  %2634 = vmatprep.subr.mxu0 %v2599_v53 }
 0x48f   : > { %v2767_v61 = vsel %vm1208_vm4, %v2765_v56, %v2763_v25  ;;  %v2851_v2 = vsel %vm1294_vm3, %v2848_v15, %v2850_v59  ;;  %v2852_v3 = vsel %vm1294_vm3, %v2850_v59, %v2848_v15  ;;  %2635 = vmatpush1.msra.mxu0 %v2598_v52  ;;  %2668 = vmatprep.mubr.f32.mxu0 %v4078_v0 }
 0x490   : > { %v2769_v5 = vmul.f32 %v2767_v61, %v4408_v31  ;;  %v2853_v4 = vmul.f32 %v2851_v2, %v4374_v16  ;;  %v2854_v8 = vmul.f32 %v2852_v3, %v4403_v30  ;;  %2720 = vmatpush1.msra.mxu1 %v2683_v54  ;;  %2753 = vmatprep.mubr.f32.mxu1 %v4078_v0 }
 0x491   : > { %3960 = vmatmul.mubr.msk.f32.vlgmr.msra.gmra.mxu0 %vm624_vm1, %v4607_v6  ;;  %v2766_v9 = vsel %vm1208_vm4, %v2763_v25, %v2765_v56  ;;  %3290 = vrot.lane.b32.xlu1 %v4676_v14, %s4084_s28  ;;  %s440_s28 = scalar_lea.vmem %s4825_s13, %s4856_s14 }
 0x492   : > { %v2686_v12 = vpop.permute.xlu0 %2685  ;;  %2804 = vmatprep.subr.mxu0 %v2769_v5  ;;  %2889 = vmatprep.subr.mxu1 %v2854_v8  ;;  %v2771_v13 = vpop.permute.xlu1 %2770 }
 0x493   : > { %3961 = vmatmul.mubr.msk.f32.vlgmr.msra.gmra.mxu1 %vm624_vm1, %v2686_v12  ;;  %2805 = vmatpush1.msra.mxu0 %v2766_v9 }
 0x494   : > { %2890 = vmatpush1.msra.mxu1 %v2853_v4  ;;  %2838 = vmatprep.mubr.f32.mxu0 %v4078_v0 }
 0x495   : > { %3962 = vmatmul.mubr.msk.f32.vlgmr.msra.gmra.mxu0 %vm624_vm1, %v2771_v13  ;;  %2923 = vmatprep.mubr.f32.mxu1 %v4078_v0 }
 0x496   : > { %v2856_v6 = vpop.permute.xlu0 %2855  ;;  %3030 = vmatprep.mubr.f32.mxu0 %v4078_v0  ;;  %3375 = vrot.lane.b32.xlu0 %v4676_v14, %s4851_s15 }
 0x497   : > { %3963 = vmatmul.mubr.msk.f32.vlgmr.msra.gmra.mxu1 %vm624_vm1, %v2856_v6 }
 0x498   : > { %3105 = vmatprep.mubr.f32.mxu1 %v4078_v0 }
 0x49f   : > { %v2936_v57 = vpop.permute.xlu1 %2935 }
 0x4c5   : > { %v2332_v19 = vpop.f32.mrf.mxu0 }
 0x4c7   : > { %v2334_v23 = vpop.f32.mrf.mxu0 }
 0x544   : > { %v2257_v15 = vpop.f32.mrf.mxu1 }
 0x545   : > { %v2333_v21 = vadd.f32 %v2332_v19, %v2257_v15 }
 0x546   : > { %v2259_v18 = vpop.f32.mrf.mxu1 }
 0x547   : > { %v2335_v43 = vadd.f32 %v2334_v23, %v2259_v18  ;;  %v484_v23 = vld [vmem:[%s4814_s2] sm:$0xff] }
 0x548   : > { %v2415_v20 = vpop.f32.mrf.mxu1 }
 0x549   : > { %v2420_v24 = vadd.f32 %v2415_v20, %v2333_v21  ;;  %v3038_v21 = vpop.permute.xlu0 %3037 }
 0x54a   : > { %v2417_v22 = vpop.f32.mrf.mxu1 }
 0x54b   : > { %v2421_v29 = vadd.f32 %v2417_v22, %v2335_v43  ;;  %v3707_v22 = vld [vmem:[%s4822_s10] sm:$0xff] }
 0x54c   : > { %v3743_v43 = vld [vmem:[%s4824_s12] sm:$0xff] }
 0x54d   : > { %v2500_v25 = vpop.f32.mrf.mxu0  ;;  %v2585_v27 = vpop.f32.mrf.mxu1 }
 0x54e   : > { %v2505_v32 = vadd.f32 %v2500_v25, %v2420_v24  ;;  %v3744_v24 = vld [vmem:[%s4824_s12 + $0x8] sm:$0xff]  ;;  %v3206_v25 = vpop.permute.xlu0 %3205 }
 0x54f   : > { %v2502_v33 = vpop.f32.mrf.mxu0  ;;  %v2587_v39 = vpop.f32.mrf.mxu1 }
 0x550   : > { %v2590_v38 = vadd.f32 %v2585_v27, %v2505_v32  ;;  %v2506_v36 = vadd.f32 %v2502_v33, %v2421_v29  ;;  %v3121_v27 = vpop.permute.xlu1 %3120 }
 0x551   : > { %v2670_v37 = vpop.f32.mrf.mxu0 }
 0x552   : > { %v2591_v40 = vadd.f32 %v2587_v39, %v2506_v36  ;;  %v2675_v58 = vadd.f32 %v2670_v37, %v2590_v38  ;;  %v4724_v29 = vpop.permute.xlu0 %3375 }
 0x553   : > { %v2672_v41 = vpop.f32.mrf.mxu0  ;;  %v2755_v42 = vpop.f32.mrf.mxu1 }
 0x554   : > { %v2676_v44 = vadd.f32 %v2672_v41, %v2591_v40  ;;  %v2760_v45 = vadd.f32 %v2755_v42, %v2675_v58  ;;  %v3291_v32 = vpop.permute.xlu1 %3290 }
 0x555   : > { %v2840_v35 = vpop.f32.mrf.mxu0  ;;  %v2757_v48 = vpop.f32.mrf.mxu1 }
 0x556   : > { %v2845_v49 = vadd.f32 %v2840_v35, %v2760_v45  ;;  %v2761_v50 = vadd.f32 %v2757_v48, %v2676_v44 }
 0x557   : > { %v2842_v51 = vpop.f32.mrf.mxu0  ;;  %v2925_v52 = vpop.f32.mrf.mxu1 }
 0x558   : > { %v2846_v53 = vadd.f32 %v2842_v51, %v2761_v50  ;;  %v2930_v54 = vadd.f32 %v2925_v52, %v2845_v49 }
 0x559   : > { %v2927_v56 = vpop.f32.mrf.mxu1 }
 0x55a   : > { %v2938_v59 = vadd.f32 %v2936_v57, %v2930_v54  ;;  %v2931_v61 = vadd.f32 %v2927_v56, %v2846_v53 }
 0x55c   : > { %v2940_v2 = vsub.f32 0.0, %v2938_v59  ;;  %v2939_v3 = vadd.f32 %v2936_v57, %v2931_v61 }
 0x55e   : > { %v2942_v5 = vmul.f32 1.442695, %v2940_v2  ;;  %v2941_v4 = vsub.f32 0.0, %v2939_v3 }
 0x560   : > { %4030 = vpow2.f32 %v2942_v5  ;;  %v2944_v8 = vmul.f32 1.442695, %v2941_v4 }
 0x562   : > { %4032 = vpow2.f32 %v2944_v8 }
 0x56d   : > { %v4031_v9 = vpop.eup %4030 }
 0x56e   : > { %v2946_v12 = vadd.f32 1.0, %v4031_v9 }
 0x56f   : > { %v4033_v13 = vpop.eup %4032 }
 0x570   : > { %4034 = vrcp.f32 %v2946_v12  ;;  %v2947_v6 = vadd.f32 1.0, %v4033_v13 }
 0x572   : > { %4036 = vrcp.f32 %v2947_v6 }
 0x57d   : > { %v4035_v15 = vpop.eup %4034 }
 0x57e   : > { %v2952_v18 = vmul.f32 %v4035_v15, %v2938_v59 }
 0x57f   : > { %v4037_v19 = vpop.eup %4036 }
 0x580   : > { %v2953_v20 = vmul.f32 %v4037_v19, %v2939_v3  ;;  %3282 = vrot.lane.b32.xlu1 %v2952_v18, %s4854_s22  ;;  %2955 = vrot.lane.b32.xlu0 %v2952_v18, %s4852_s27 }
 0x582   : > { %3071 = vmatprep.subr.mxu1 %v2953_v20 }
 0x583   : > { %3072 = vmatpush1.msra.mxu1 %v2952_v18 }
 0x584   : > { %3452 = vrot.lane.b32.xlu1 %v2952_v18, %s4090_s18  ;;  %3112 = vrot.lane.b32.xlu0 %v2952_v18, %s4849_s29 }
 0x585   : > { %3965 = vmatmul.mubr.msk.f32.vlgmr.msra.gmra.mxu1 %vm624_vm1, %v3038_v21 }
 0x586   : > { %3273 = vmatprep.mubr.f32.mxu1 %v4078_v0 }
 0x588   : > { %3622 = vrot.lane.b32.xlu1 %v2952_v18, %s4091_s19  ;;  %3197 = vrot.lane.b32.xlu0 %v2952_v18, %s4850_s16 }
 0x58c   : > { %2957 = vrot.lane.b32.xlu1 %v2953_v20, %s4852_s27  ;;  %3367 = vrot.lane.b32.xlu0 %v2952_v18, %s4855_s24 }
 0x590   : > { %3114 = vrot.lane.b32.xlu1 %v2953_v20, %s4849_s29  ;;  %3537 = vrot.lane.b32.xlu0 %v2952_v18, %s4081_s23 }
 0x594   : > { %3199 = vrot.lane.b32.xlu1 %v2953_v20, %s4850_s16  ;;  %3284 = vrot.lane.b32.xlu0 %v2953_v20, %s4854_s22 }
 0x598   : > { %3369 = vrot.lane.b32.xlu1 %v2953_v20, %s4855_s24  ;;  %3454 = vrot.lane.b32.xlu0 %v2953_v20, %s4090_s18 }
 0x59c   : > { %3539 = vrot.lane.b32.xlu1 %v2953_v20, %s4081_s23  ;;  %3624 = vrot.lane.b32.xlu0 %v2953_v20, %s4091_s19 }
 0x5a0   : > { %3460 = vrot.lane.b32.xlu1 %v4676_v14, %s4092_s20  ;;  %3545 = vrot.lane.b32.xlu0 %v4676_v14, %s4093_s21 }
 0x5a4   : > { %3630 = vrot.lane.b32.xlu1 %v4676_v14, %s4853_s30  ;;  %3710 = vperm.xlu0 %4004, %v3707_v22  }
 0x5a8   : > { %488 = vperm.xlu1 %4005, %v484_v23   ;;  %3747 = vperm.xlu0 %4004, %v3743_v43  }
 0x5ac   : > { %3752 = vperm.xlu1 %4005, %v3744_v24  }
 0x5f2   : > { %v3283_v33 = vpop.permute.xlu1 %3282  ;;  %v2956_v38 = vpop.permute.xlu0 %2955 }
 0x5f6   : > { %v3453_v36 = vpop.permute.xlu1 %3452  ;;  %v3113_v39 = vpop.permute.xlu0 %3112 }
 0x5fa   : > { %v3623_v37 = vpop.permute.xlu1 %3622  ;;  %v3198_v40 = vpop.permute.xlu0 %3197 }
 0x5fe   : > { %v2958_v58 = vpop.permute.xlu1 %2957  ;;  %v3368_v41 = vpop.permute.xlu0 %3367 }
 0x5ff   : > { %v2959_v42 = vsel %vm619_vm6, %v2956_v38, %v2958_v58  ;;  %v2960_v44 = vsel %vm619_vm6, %v2958_v58, %v2956_v38 }
 0x600   : > { %v2961_v45 = vmul.f32 %v2960_v44, %v4294_v46  ;;  %v2962_v35 = vmul.f32 %v2959_v42, %v4299_v47 }
 0x602   : > { %v3115_v48 = vpop.permute.xlu1 %3114  ;;  %2996 = vmatprep.subr.mxu0 %v2962_v35  ;;  %v3538_v49 = vpop.permute.xlu0 %3537 }
 0x603   : > { %v3117_v50 = vsel %vm778_vm8, %v3115_v48, %v3113_v39  ;;  %2997 = vmatpush1.msra.mxu0 %v2961_v45  ;;  %v3116_v51 = vsel %vm778_vm8, %v3113_v39, %v3115_v48 }
 0x604   : > { %v3118_v52 = vmul.f32 %v3117_v50, %v4315_v55  ;;  %3964 = vmatmul.mubr.msk.f32.vlgmr.msra.gmra.mxu0 %vm624_vm1, %v4676_v14  ;;  %3154 = vmatprep.subr.mxu0 %v3116_v51 }
 0x605   : > { %3188 = vmatprep.mubr.f32.mxu0 %v4078_v0 }
 0x606   : > { %v3200_v46 = vpop.permute.xlu1 %3199  ;;  %3155 = vmatpush1.msra.mxu0 %v3118_v52  ;;  %v3285_v53 = vpop.permute.xlu0 %3284 }
 0x607   : > { %v3201_v54 = vsel %vm864_vm11, %v3198_v40, %v3200_v46  ;;  %v3202_v57 = vsel %vm864_vm11, %v3200_v46, %v3198_v40  ;;  %v3286_v56 = vsel %vm950_vm13, %v3283_v33, %v3285_v53  ;;  %v3287_v55 = vsel %vm950_vm13, %v3285_v53, %v3283_v33 }
 0x608   : > { %v3203_v14 = vmul.f32 %v3202_v57, %v4334_v62  ;;  %v3204_v59 = vmul.f32 %v3201_v54, %v4339_v63  ;;  %v3288_v61 = vmul.f32 %v3287_v55, %v4355_v7  ;;  %v3289_v2 = vmul.f32 %v3286_v56, %v4299_v47  ;;  %3966 = vmatmul.mubr.msk.f32.vlgmr.msra.gmra.mxu0 %vm624_vm1, %v3121_v27 }
 0x609   : > { %3358 = vmatprep.mubr.f32.mxu0 %v4078_v0 }
 0x60a   : > { %v3370_v3 = vpop.permute.xlu1 %3369  ;;  %3324 = vmatprep.subr.mxu0 %v3289_v2  ;;  %v3455_v5 = vpop.permute.xlu0 %3454  ;;  %3239 = vmatprep.subr.mxu1 %v3204_v59 }
 0x60b   : > { %v3371_v4 = vsel %vm1036_vm0, %v3368_v41, %v3370_v3  ;;  %v3372_v62 = vsel %vm1036_vm0, %v3370_v3, %v3368_v41  ;;  %v3456_v8 = vsel %vm1122_vm15, %v3453_v36, %v3455_v5  ;;  %v3457_v47 = vsel %vm1122_vm15, %v3455_v5, %v3453_v36  ;;  %3240 = vmatpush1.msra.mxu1 %v3203_v14 }
 0x60c   : > { %v3373_v9 = vmul.f32 %v3371_v4, %v4374_v16  ;;  %v3374_v12 = vmul.f32 %v3372_v62, %v4339_v63  ;;  %v3458_v13 = vmul.f32 %v3456_v8, %v4355_v7  ;;  %v3459_v6 = vmul.f32 %v3457_v47, %v4377_v17  ;;  %3325 = vmatpush1.msra.mxu0 %v3288_v61 }
 0x60d   : > { %3967 = vmatmul.mubr.msk.f32.vlgmr.msra.gmra.mxu1 %vm624_vm1, %v3206_v25  ;;  %3968 = vmatmul.mubr.msk.f32.vlgmr.msra.gmra.mxu0 %vm624_vm1, %v3291_v32 }
 0x60e   : > { %v3540_v15 = vpop.permute.xlu1 %3539  ;;  %3494 = vmatprep.subr.mxu0 %v3459_v6  ;;  %v3625_v18 = vpop.permute.xlu0 %3624  ;;  %3409 = vmatprep.subr.mxu1 %v3374_v12 }
 0x60f   : > { %v3542_v19 = vsel %vm1208_vm4, %v3540_v15, %v3538_v49  ;;  %v3626_v20 = vsel %vm1294_vm3, %v3623_v37, %v3625_v18  ;;  %v3627_v63 = vsel %vm1294_vm3, %v3625_v18, %v3623_v37  ;;  %3410 = vmatpush1.msra.mxu1 %v3373_v9  ;;  %3443 = vmatprep.mubr.f32.mxu1 %v4078_v0 }
 0x610   : > { %v3544_v7 = vmul.f32 %v3542_v19, %v4408_v31  ;;  %v3628_v17 = vmul.f32 %v3626_v20, %v4374_v16  ;;  %v3629_v21 = vmul.f32 %v3627_v63, %v4403_v30  ;;  %3495 = vmatpush1.msra.mxu0 %v3458_v13  ;;  %3528 = vmatprep.mubr.f32.mxu0 %v4078_v0 }
 0x611   : > { %3969 = vmatmul.mubr.msk.f32.vlgmr.msra.gmra.mxu1 %vm624_vm1, %v4724_v29  ;;  %v3541_v22 = vsel %vm1208_vm4, %v3538_v49, %v3540_v15 }
 0x612   : > { %v3461_v23 = vpop.permute.xlu1 %3460  ;;  %3579 = vmatprep.subr.mxu1 %v3544_v7  ;;  %3664 = vmatprep.subr.mxu0 %v3629_v21  ;;  %v3546_v43 = vpop.permute.xlu0 %3545 }
 0x613   : > { %3970 = vmatmul.mubr.msk.f32.vlgmr.msra.gmra.mxu0 %vm624_vm1, %v3461_v23  ;;  %3580 = vmatpush1.msra.mxu1 %v3541_v22 }
 0x614   : > { %3665 = vmatpush1.msra.mxu0 %v3628_v17  ;;  %3613 = vmatprep.mubr.f32.mxu1 %v4078_v0 }
 0x615   : > { %3971 = vmatmul.mubr.msk.f32.vlgmr.msra.gmra.mxu1 %vm624_vm1, %v3546_v43  ;;  %3698 = vmatprep.mubr.f32.mxu0 %v4078_v0 }
 0x616   : > { %v3631_v16 = vpop.permute.xlu1 %3630  ;;  %3826 = vmatprep.mubr.f32.mxu1 %v4078_v0 }
 0x617   : > { %3972 = vmatmul.mubr.msk.f32.vlgmr.msra.gmra.mxu0 %vm624_vm1, %v3631_v16  ;;  %vm3755_vm1 = vcmask 261120  }
 0x61f   : > { %v3711_v2 = vpop.permute.xlu0 %3710 }
 0x623   : > { %v489_v50 = vpop.permute.xlu1 %488 }
 0x624   : > { %v572_v14 = vadd.f32 %v4211_v11, %v489_v50  ;;  %v570_v3 = vadd.f32 %v4209_v10, %v489_v50 }
 0x626   : > { %v581_v8 = vsub.f32 0.0, %v572_v14  ;;  %v580_v12 = vsub.f32 0.0, %v570_v3 }
 0x628   : > { %v586_v15 = vmul.f32 1.442695, %v581_v8  ;;  %v584_v19 = vmul.f32 1.442695, %v580_v12 }
 0x645   : > { %v3107_v31 = vpop.f32.mrf.mxu1 }
 0x647   : > { %v3109_v29 = vpop.f32.mrf.mxu1 }
 0x6c4   : > { %v3032_v34 = vpop.f32.mrf.mxu0 }
 0x6c5   : > { %v3108_v25 = vadd.f32 %v3107_v31, %v3032_v34 }
 0x6c6   : > { %v3034_v30 = vpop.f32.mrf.mxu0 }
 0x6c7   : > { %v3110_v32 = vadd.f32 %v3109_v29, %v3034_v30 }
 0x6c8   : > { %v3190_v24 = vpop.f32.mrf.mxu0 }
 0x6c9   : > { %v3195_v33 = vadd.f32 %v3190_v24, %v3108_v25 }
 0x6ca   : > { %v3192_v27 = vpop.f32.mrf.mxu0 }
 0x6cb   : > { %v3196_v39 = vadd.f32 %v3192_v27, %v3110_v32  ;;  %v3733_v32 = vld [vmem:[%s4823_s11] sm:$0xff] }
 0x6cd   : > { %v3275_v38 = vpop.f32.mrf.mxu1  ;;  %v3360_v36 = vpop.f32.mrf.mxu0 }
 0x6ce   : > { %v3280_v37 = vadd.f32 %v3275_v38, %v3195_v33 }
 0x6cf   : > { %v3277_v40 = vpop.f32.mrf.mxu1  ;;  %v3362_v42 = vpop.f32.mrf.mxu0 }
 0x6d0   : > { %v3365_v58 = vadd.f32 %v3360_v36, %v3280_v37  ;;  %v3281_v41 = vadd.f32 %v3277_v40, %v3196_v39  ;;  %v3753_v39 = vpop.permute.xlu1 %3752 }
 0x6d1   : > { %v3445_v44 = vpop.f32.mrf.mxu1 }
 0x6d2   : > { %v3366_v45 = vadd.f32 %v3362_v42, %v3281_v41  ;;  %v3450_v35 = vadd.f32 %v3445_v44, %v3365_v58 }
 0x6d3   : > { %v3447_v48 = vpop.f32.mrf.mxu1  ;;  %v3530_v49 = vpop.f32.mrf.mxu0 }
 0x6d4   : > { %v3451_v51 = vadd.f32 %v3447_v48, %v3366_v45  ;;  %v3535_v52 = vadd.f32 %v3530_v49, %v3450_v35 }
 0x6d5   : > { %v3532_v46 = vpop.f32.mrf.mxu0  ;;  %v3615_v53 = vpop.f32.mrf.mxu1 }
 0x6d6   : > { %v3536_v54 = vadd.f32 %v3532_v46, %v3451_v51  ;;  %v3620_v57 = vadd.f32 %v3615_v53, %v3535_v52 }
 0x6d7   : > { %v3617_v56 = vpop.f32.mrf.mxu1  ;;  %v3700_v55 = vpop.f32.mrf.mxu0 }
 0x6d8   : > { %v3621_v59 = vadd.f32 %v3617_v56, %v3536_v54  ;;  %v3705_v61 = vadd.f32 %v3700_v55, %v3620_v57 }
 0x6d9   : > { %v3702_v5 = vpop.f32.mrf.mxu0 }
 0x6da   : > { %v3713_v4 = vadd.f32 %v3711_v2, %v3705_v61  ;;  %v3706_v62 = vadd.f32 %v3702_v5, %v3621_v59 }
 0x6dc   : > { %v3715_v47 = vsub.f32 0.0, %v3713_v4  ;;  %v3714_v9 = vadd.f32 %v3711_v2, %v3706_v62 }
 0x6de   : > { %v3717_v13 = vmul.f32 1.442695, %v3715_v47  ;;  %v3716_v6 = vsub.f32 0.0, %v3714_v9 }
 0x6e0   : > { %4038 = vpow2.f32 %v3717_v13  ;;  %v3719_v18 = vmul.f32 1.442695, %v3716_v6 }
 0x6e2   : > { %4040 = vpow2.f32 %v3719_v18 }
 0x6e3   : > { %4042 = vpow2.f32 %v586_v15 }
 0x6e4   : > { %4044 = vpow2.f32 %v584_v19 }
 0x6ed   : > { %v4039_v11 = vpop.eup %4038 }
 0x6ee   : > { %v3721_v20 = vadd.f32 1.0, %v4039_v11 }
 0x6ef   : > { %v4041_v63 = vpop.eup %4040 }
 0x6f0   : > { %4046 = vrcp.f32 %v3721_v20  ;;  %v3722_v10 = vadd.f32 1.0, %v4041_v63  ;;  %v4043_v7 = vpop.eup %4042 }
 0x6f1   : > { %v4045_v17 = vpop.eup %4044  ;;  %v593_v21 = vadd.f32 1.0, %v4043_v7 }
 0x6f2   : > { %4048 = vrcp.f32 %v3722_v10  ;;  %v592_v22 = vadd.f32 1.0, %v4045_v17 }
 0x6f3   : > { %4050 = vrcp.f32 %v593_v21 }
 0x6f4   : > { %4052 = vrcp.f32 %v592_v22 }
 0x6fd   : > { %v4047_v23 = vpop.eup %4046 }
 0x6fe   : > { %v3727_v16 = vmul.f32 %v4047_v23, %v3713_v4 }
 0x6ff   : > { %v4049_v43 = vpop.eup %4048 }
 0x700   : > { %v3728_v34 = vmul.f32 %v4049_v43, %v3714_v9  ;;  %v3729_v31 = vadd.f32 %v3727_v16, %v4557_v60  ;;  %v4051_v24 = vpop.eup %4050 }
 0x701   : > { %v4053_v25 = vpop.eup %4052  ;;  %v605_v27 = vmul.f32 %v4051_v24, %v572_v14 }
 0x702   : > { %v3730_v30 = vadd.f32 %v3728_v34, %v4560_v1  ;;  %v604_v29 = vmul.f32 %v4053_v25, %v570_v3 }
 0x704   : > { %3786 = vmatprep.subr.mxu1 %v3730_v30 }
 0x705   : > { %3787 = vmatpush1.msra.mxu1 %v3729_v31 }
 0x706   : > { %3788 = vmatprep.subr.mxu1 %v4560_v1  ;;  %v3748_v1 = vpop.permute.xlu0 %3747 }
 0x707   : > { %3789 = vmatpush1.msra.mxu1 %v4557_v60  ;;  %v3734_v60 = vld [vmem:[%s4823_s11 + $0x8] sm:$0xff] }
 0x708   : > { %3790 = vmatprep.subr.mxu1 %v4215_v28 }
 0x709   : > { %3791 = vmatpush1.msra.mxu1 %v4213_v26 }
 0x70a   : > { %3792 = vmatprep.subr.mxu1 %v605_v27 }
 0x70b   : > { %3793 = vmatpush1.msra.mxu1 %v604_v29 }
 0x70c   : > { %3973 = vmatmul.mubr.msk.f32.vlgmr.msra.gmra.mxu1 %vm3755_vm1, %v3733_v32 }
 0x70d   : > { %3832 = vmatprep.mubr.f32.mxu1 %v4078_v0 }
 0x710   : > { %3974 = vmatmul.mubr.msk.f32.gmra.mxu1 %vm3755_vm1, %v3734_v60 }
 0x7cc   : > { %v3828_v28 = vpop.f32.mrf.mxu1 }
 0x7cd   : > { %v3829_v33 = vadd.f32 %v3828_v28, %v3748_v1 }
 0x7ce   : > { %v3830_v38 = vpop.f32.mrf.mxu1 }
 0x7cf   : > { %v3839_v26 = vsub.f32 0.0, %v3829_v33  ;;  %v3831_v36 = vadd.f32 %v3830_v38, %v3748_v1 }
 0x7d0   : > { %v3834_v37 = vpop.f32.mrf.mxu1 }
 0x7d1   : > { %v3843_v40 = vmul.f32 1.442695, %v3839_v26  ;;  %v3840_v58 = vsub.f32 0.0, %v3831_v36  ;;  %v3835_v41 = vadd.f32 %v3834_v37, %v3753_v39 }
 0x7d2   : > { %v3836_v42 = vpop.f32.mrf.mxu1 }
 0x7d3   : > { %4054 = vpow2.f32 %v3843_v40  ;;  %v3845_v44 = vmul.f32 1.442695, %v3840_v58  ;;  %v3841_v0 = vsub.f32 0.0, %v3835_v41  ;;  %v3837_v45 = vadd.f32 %v3836_v42, %v3753_v39 }
 0x7d5   : > { %4056 = vpow2.f32 %v3845_v44  ;;  %v3847_v35 = vmul.f32 1.442695, %v3841_v0  ;;  %v3842_v48 = vsub.f32 0.0, %v3837_v45 }
 0x7d7   : > { %4058 = vpow2.f32 %v3847_v35  ;;  %v3849_v49 = vmul.f32 1.442695, %v3842_v48 }
 0x7d9   : > { %4060 = vpow2.f32 %v3849_v49 }
 0x7e0   : > { %v4055_v50 = vpop.eup %4054 }
 0x7e1   : > { %v3851_v51 = vadd.f32 1.0, %v4055_v50 }
 0x7e2   : > { %v4057_v52 = vpop.eup %4056 }
 0x7e3   : > { %4062 = vrcp.f32 %v3851_v51  ;;  %v3852_v46 = vadd.f32 1.0, %v4057_v52 }
 0x7e4   : > { %v4059_v53 = vpop.eup %4058 }
 0x7e5   : > { %4064 = vrcp.f32 %v3852_v46  ;;  %v3853_v54 = vadd.f32 1.0, %v4059_v53 }
 0x7e6   : > { %v4061_v57 = vpop.eup %4060 }
 0x7e7   : > { %4066 = vrcp.f32 %v3853_v54  ;;  %v3854_v56 = vadd.f32 1.0, %v4061_v57 }
 0x7e9   : > { %4068 = vrcp.f32 %v3854_v56 }
 0x7f0   : > { %v4063_v55 = vpop.eup %4062 }
 0x7f1   : > { %v3863_v14 = vmul.f32 %v4063_v55, %v3829_v33 }
 0x7f2   : > { %v4065_v59 = vpop.eup %4064 }
 0x7f3   : > { %3867 = vst [vmem:[%s440_s28] sm:$0xff] %v3863_v14  ;;  %v3864_v61 = vmul.f32 %v4065_v59, %v3831_v36 }
 0x7f4   : > { %v4067_v2 = vpop.eup %4066 }
 0x7f5   : > { %3868 = vst [vmem:[%s440_s28 + $0x8] sm:$0xff] %v3864_v61  ;;  %v3865_v3 = vmul.f32 %v4067_v2, %v3835_v41 }
 0x7f6   : > { %v4069_v5 = vpop.eup %4068 }
 0x7f7   : > { %3869 = vst [vmem:[%s440_s28 + $0x10] sm:$0xff] %v3865_v3  ;;  %v3866_v4 = vmul.f32 %v4069_v5, %v3837_v45 }
 0x7f9   : > { %3870 = vst [vmem:[%s440_s28 + $0x18] sm:$0xff] %v3866_v4 }
 0x7fa PF: > { %s23_s25 = sadd.s32 1, %s4076_s25  }
 0x7fb   : > { %p20_p4 = scmp.ge.s32.totalorder %s23_s25, 4  }
 0x7fd   :  { %22 = sbr.rel (!%p20_p4) target bundleno = 1 (0x1), region = 102 }

</bundles_post_ra>
